<compile_context>
chip_gen: v6e
topology: v6e:2x2x1
jax: 0.10.0
libtpu: 0.0.40
codegen_flags: <defaults>
</compile_context>

<pallas_src>
import functools

import jax
import jax.numpy as jnp
import numpy as np
from jax import lax
from jax.experimental import pallas as pl
from jax.experimental.pallas import tpu as pltpu

LANE = 128
SUBLANE = 16     # bf16 sublane tile; batch padded to a multiple of this
UNROLL = 8       # partial unroll of the recurrence (Tc is a multiple of it)


def _round_up(x, m):
    return (x + m - 1) // m * m


def _vmem_capacity_bytes():
    """Generation-aware VMEM capacity (v7x: 64 MiB/TC, v5e/v6e: 128 MiB)."""
    try:
        return int(pltpu.get_tpu_info().vmem_capacity_bytes)
    except Exception:
        return 64 * 1024 * 1024          # conservative (v7x) fallback


def _fc_vocab_tile(Hp, V):
    """FC vocab tile: ~1 MiB bf16 weight block per grid step (lane-dense)."""
    target = max(LANE, ((1 << 20) // (Hp * 2)) // LANE * LANE)
    return int(min(target, _round_up(V, LANE)))


def _choose_time_chunk(T, Bb, Ep, Hp, vmem_budget):
    """Pick Tc (multiple of UNROLL): >= ~512 matmul rows per chunk to fill the
    MXU and amortize the ~0.35us/grid-step overhead, capped by the VMEM budget
    (x double-buffer + bf16 gx scratch scale with Tc) and by round_up(T, 8)."""
    G = 4 * Hp
    per_tc = 2 * Bb * Ep * 2 + Bb * G * 2            # x (2 bufs, bf16) + gx (bf16)
    fixed = (Ep * G * 2 + Hp * G * 2 + G * 4         # single-buffered weights+bias
             + Bb * Hp * (2 + 4)                     # h (bf16) + c (f32)
             + 2 * Bb * Hp * 2)                      # hout block (2 bufs, bf16)
    if vmem_budget > fixed + UNROLL * per_tc:
        tc_vmem = (vmem_budget - fixed) // per_tc
    else:
        tc_vmem = UNROLL
    tc_rows = max(UNROLL, (512 + Bb - 1) // Bb)
    tc = min(tc_rows, tc_vmem, 256, _round_up(T, UNROLL))
    return max(UNROLL, tc // UNROLL * UNROLL)


def _k1_vmem_bytes(Tc, Bb, Ep, Hp):
    G = 4 * Hp
    rows = Tc * Bb
    return (2 * rows * Ep * 2 + rows * G * 2
            + Ep * G * 2 + Hp * G * 2 + G * 4
            + Bb * Hp * (2 + 4) + 2 * Bb * Hp * 2)


# ---------------------------------------------------------------------------
# Kernel 1: LSTM recurrence.  grid = (batch_blocks [parallel],
#                                     time_chunks  [arbitrary])
# ---------------------------------------------------------------------------
def _lstm_chunk_kernel(x_ref, wih_hbm, whh_hbm, bias_hbm, hout_ref,
                       wih_vmem, whh_vmem, bias_vmem, h_scr, c_scr,
                       gx_scr, dma_sems, *, t_real, masked, unroll):
    Bb, Hp = h_scr.shape
    rows, G = gx_scr.shape
    Tc = rows // Bb
    t_chunk = pl.program_id(1)

    @pl.when(t_chunk == 0)
    def _init():
        # One-time (per batch block) load of the loop-invariant weights into
        # SINGLE-buffered VMEM scratch (halves the weight footprint vs. the
        # default double-buffered BlockSpec path), plus h/c reset.
        copies = [pltpu.make_async_copy(wih_hbm, wih_vmem, dma_sems.at[0]),
                  pltpu.make_async_copy(whh_hbm, whh_vmem, dma_sems.at[1]),
                  pltpu.make_async_copy(bias_hbm, bias_vmem, dma_sems.at[2])]
        for cp in copies:
            cp.start()
        for cp in copies:
            cp.wait()
        h_scr[...] = jnp.zeros_like(h_scr)
        c_scr[...] = jnp.zeros_like(c_scr)

    # Hoisted input projection: ONE big MXU matmul for the whole time chunk,
    # bias folded in; stored bf16 to halve the largest (Tc-scaling) scratch.
    gx = (jnp.dot(x_ref[0], wih_vmem[...], preferred_element_type=jnp.float32)
          + bias_vmem[...])
    gx_scr[...] = gx.astype(jnp.bfloat16)

    t0 = t_chunk * Tc

    def step(t, carry):
        h_prev, c_prev = carry                              # bf16, f32
        row0 = pl.multiple_of(t * Bb, Bb)
        # W_hh^T is streamed from VMEM each step (not pinned in vregs across
        # the unrolled loop); gate accumulation stays f32.
        gates = (gx_scr[pl.ds(row0, Bb), :].astype(jnp.float32)
                 + jnp.dot(h_prev, whh_vmem[...],
                           preferred_element_type=jnp.float32))
        # TODO(synk): on v6e/v7x the gate nonlinearities could run in bf16 on
        # the EUP for ~2x transcendental throughput; kept f32 for portability.
        i_g = jax.nn.sigmoid(gates[:, 0 * Hp:1 * Hp])
        f_g = jax.nn.sigmoid(gates[:, 1 * Hp:2 * Hp])
        g_g = jnp.tanh(gates[:, 2 * Hp:3 * Hp])
        o_g = jax.nn.sigmoid(gates[:, 3 * Hp:4 * Hp])
        c_new = f_g * c_prev + i_g * g_g
        h_new = o_g * jnp.tanh(c_new)
        if masked:
            # Padded timesteps are NOT inert (sigmoid(0)=0.5): keep prev state.
            keep = ((t0 + t) < t_real).astype(jnp.float32)  # 1.0 real, 0.0 pad
            c_new = keep * c_new + (1.0 - keep) * c_prev
            h_new = keep * h_new + (1.0 - keep) * h_prev.astype(jnp.float32)
        return h_new.astype(jnp.bfloat16), c_new

    h, c = lax.fori_loop(0, Tc, step, (h_scr[...], c_scr[...]), unroll=unroll)
    h_scr[...] = h
    c_scr[...] = c
    # Written every chunk (cheap Bb x Hp store): no reliance on "only the last
    # grid step's write matters" writeback behaviour.
    hout_ref[...] = h


# ---------------------------------------------------------------------------
# Kernel 2: final Linear, tiled over the (padded) vocab dimension.
# ---------------------------------------------------------------------------
def _fc_kernel(h_ref, w_ref, b_ref, o_ref):
    o_ref[...] = (
        jnp.dot(h_ref[...], w_ref[...], preferred_element_type=jnp.float32)
        + b_ref[...])


# ---------------------------------------------------------------------------
# One-time weight preparation (hoisted out of the jitted forward).
# ---------------------------------------------------------------------------
def prepare_params(params):
    emb = params["embedding"]          # (V, E)
    w_ih = params["w_ih"]              # (4H, E)
    w_hh = params["w_hh"]              # (4H, H)
    bias = params["b_ih"] + params["b_hh"]
    w_fc = params["w_fc"]              # (V, H)
    b_fc = params["b_fc"]              # (V,)

    V, E = emb.shape
    H = w_hh.shape[1]
    Ep, Hp = _round_up(E, LANE), _round_up(H, LANE)
    tile_v = _fc_vocab_tile(Hp, V)
    Vp = _round_up(V, tile_v)

    def pad_gate_w(w, in_dim, in_pad):
        # (4H, in_dim) -> (in_pad, 4Hp); per-gate column blocks of width Hp.
        w4 = w.reshape(4, H, in_dim)
        w4 = jnp.pad(w4, ((0, 0), (0, Hp - H), (0, in_pad - in_dim)))
        return w4.reshape(4 * Hp, in_pad).T

    return {
        "emb": emb.astype(jnp.bfloat16),                                # (V, E)
        "wih_t": pad_gate_w(w_ih, E, Ep).astype(jnp.bfloat16),          # (Ep, 4Hp)
        "whh_t": pad_gate_w(w_hh, H, Hp).astype(jnp.bfloat16),          # (Hp, 4Hp)
        "bias": jnp.pad(bias.reshape(4, H), ((0, 0), (0, Hp - H)))
                  .reshape(1, 4 * Hp).astype(jnp.float32),              # (1, 4Hp)
        "wfc_t": jnp.pad(w_fc, ((0, Vp - V), (0, Hp - H))).T
                   .astype(jnp.bfloat16),                               # (Hp, Vp)
        "bfc": jnp.pad(b_fc, (0, Vp - V)).reshape(1, Vp)
                 .astype(jnp.float32),                                  # (1, Vp)
    }


# ---------------------------------------------------------------------------
# Forward pass (jit this; weight prep is NOT redone per call).
# ---------------------------------------------------------------------------
def lstm_forward_prepared(tokens, prep):
    """tokens: (B, T) int32.  Returns (B, vocab) float32 logits."""
    emb, wih_t, whh_t = prep["emb"], prep["wih_t"], prep["whh_t"]
    bias, wfc_t, bfc = prep["bias"], prep["wfc_t"], prep["bfc"]

    B, T = tokens.shape
    V, E = emb.shape
    Ep, G = wih_t.shape
    Hp = whh_t.shape[0]
    Vp = wfc_t.shape[1]

    Bp = _round_up(B, SUBLANE)
    # Leading "parallel" batch-block axis so v7x's 2nd TensorCore is busy.
    Bb = Bp // 2 if (Bp >= 32 and Bp % 32 == 0) else Bp
    n_bb = Bp // Bb

    phys = _vmem_capacity_bytes()
    Tc = _choose_time_chunk(T, Bb, Ep, Hp, phys // 2)
    Tp = _round_up(T, Tc)
    n_chunks = Tp // Tc
    masked = Tp != T

    f32, bf16 = jnp.float32, jnp.bfloat16

    # ---- embedding gather (data-dependent -> plain JAX glue), time-major ---
    # TODO(synk): the data-dependent embedding gather has no clean BlockSpec
    # expression; it stays in JAX glue.  Gather first, pad after.
    tok_p = jnp.pad(tokens, ((0, Bp - B), (0, 0)))            # (Bp, T)
    tok_r = tok_p.reshape(n_bb, Bb, T).transpose(0, 2, 1)     # (n_bb, T, Bb)
    x = emb[tok_r]                                            # (n_bb, T, Bb, E) bf16
    x = jnp.pad(x, ((0, 0), (0, Tp - T), (0, 0), (0, Ep - E)))
    x = x.reshape(n_bb, Tp * Bb, Ep).astype(bf16)             # contiguous rows

    rows = Tc * Bb
    need1 = _k1_vmem_bytes(Tc, Bb, Ep, Hp)
    vmem1 = int(min(max(2 * need1, 16 * 1024 * 1024), phys * 85 // 100))

    kernel1 = functools.partial(_lstm_chunk_kernel,
                                t_real=T, masked=masked, unroll=UNROLL)

    h_last = pl.pallas_call(
        kernel1,
        out_shape=jax.ShapeDtypeStruct((Bp, Hp), bf16),
        grid=(n_bb, n_chunks),
        in_specs=[
            pl.BlockSpec((1, rows, Ep), lambda b, t: (b, t, 0)),    # x chunk
            pl.BlockSpec(memory_space=pl.ANY),                      # W_ih^T
            pl.BlockSpec(memory_space=pl.ANY),                      # W_hh^T
            pl.BlockSpec(memory_space=pl.ANY),                      # bias
        ],
        out_specs=pl.BlockSpec((Bb, Hp), lambda b, t: (b, 0)),
        scratch_shapes=[
            pltpu.VMEM((Ep, G), bf16),           # W_ih^T (single-buffered)
            pltpu.VMEM((Hp, G), bf16),           # W_hh^T (single-buffered)
            pltpu.VMEM((1, G), f32),             # bias
            pltpu.VMEM((Bb, Hp), bf16),          # h carry
            pltpu.VMEM((Bb, Hp), f32),           # c carry
            pltpu.VMEM((rows, G), bf16),         # precomputed x-gates (bf16)
            pltpu.SemaphoreType.DMA((3,)),       # weight-load semaphores
        ],
        compiler_params=pltpu.CompilerParams(
            dimension_semantics=("parallel", "arbitrary"),
            vmem_limit_bytes=vmem1),
    )(x, wih_t, whh_t, bias)

    # ---- final FC, tiled over vocab (large lane-dense tiles) ----------------
    tile_v = _fc_vocab_tile(Hp, V)               # Vp % tile_v == 0 by construction
    need2 = (2 * Hp * tile_v * 2 + 2 * Bp * tile_v * 4
             + 2 * tile_v * 4 + 2 * Bp * Hp * 2)
    vmem2 = int(min(max(2 * need2, 16 * 1024 * 1024), phys * 85 // 100))

    logits = pl.pallas_call(
        _fc_kernel,
        out_shape=jax.ShapeDtypeStruct((Bp, Vp), f32),
        grid=(Vp // tile_v,),
        in_specs=[
            pl.BlockSpec((Bp, Hp), lambda j: (0, 0)),
            pl.BlockSpec((Hp, tile_v), lambda j: (0, j)),
            pl.BlockSpec((1, tile_v), lambda j: (0, j)),
        ],
        out_specs=pl.BlockSpec((Bp, tile_v), lambda j: (0, j)),
        compiler_params=pltpu.CompilerParams(
            dimension_semantics=("parallel",),
            vmem_limit_bytes=vmem2),
    )(h_last, wfc_t, bfc)

    return logits[:B, :V]


def simple_lstm_forward(tokens, params):
    """Convenience wrapper (prep redone per call; prefer the split path)."""
    return lstm_forward_prepared(tokens, prepare_params(params))


# ---------------------------------------------------------------------------
# Pure-JAX f32 reference matching PyTorch nn.LSTM semantics.
# ---------------------------------------------------------------------------
def reference_forward(tokens, params):
    emb = params["embedding"]
    H = params["w_hh"].shape[1]
    B = tokens.shape[0]
    x = emb[tokens].astype(jnp.float32)                    # (B, T, E)

    wih_t = params["w_ih"].T
    whh_t = params["w_hh"].T
    bias = params["b_ih"] + params["b_hh"]

    def step(carry, xt):
        h, c = carry
        gates = xt @ wih_t + h @ whh_t + bias
        i = jax.nn.sigmoid(gates[:, 0 * H:1 * H])
        f = jax.nn.sigmoid(gates[:, 1 * H:2 * H])
        g = jnp.tanh(gates[:, 2 * H:3 * H])
        o = jax.nn.sigmoid(gates[:, 3 * H:4 * H])
        c = f * c + i * g
        h = o * jnp.tanh(c)
        return (h, c), None

    h0 = jnp.zeros((B, H), jnp.float32)
    (h, _), _ = lax.scan(step, (h0, h0), jnp.transpose(x, (1, 0, 2)))
    return h @ params["w_fc"].T + params["b_fc"]


def init_params(key, vocab_size, embed_size, hidden_size):
    ks = jax.random.split(key, 7)
    H = hidden_size
    k = 1.0 / np.sqrt(H)

    def u(kk, shape):
        return jax.random.uniform(kk, shape, jnp.float32, -k, k)

    return {
        "embedding": jax.random.normal(ks[0], (vocab_size, embed_size),
                                       jnp.float32),
        "w_ih": u(ks[1], (4 * H, embed_size)),
        "w_hh": u(ks[2], (4 * H, H)),
        "b_ih": u(ks[3], (4 * H,)),
        "b_hh": u(ks[4], (4 * H,)),
        "w_fc": u(ks[5], (vocab_size, H)),
        "b_fc": u(ks[6], (vocab_size,)),
    }


if __name__ == "__main__":
    vocab_size, embed_size, hidden_size = 32, 16, 32
    batch, seq = 2, 8

    key = jax.random.PRNGKey(0)
    k_param, k_tok = jax.random.split(key)
    params = init_params(k_param, vocab_size, embed_size, hidden_size)
    tokens = jax.random.randint(k_tok, (batch, seq), 0, vocab_size,
                                dtype=jnp.int32)

    prep = prepare_params(params)                    # one-time weight prep
    fwd = jax.jit(lstm_forward_prepared)
    out = jax.block_until_ready(fwd(tokens, prep))
    ref = jax.block_until_ready(reference_forward(tokens, params))

    assert out.shape == (batch, vocab_size)
    # bf16 MXU operands / bf16 gx scratch -> loosened tolerance vs. f32 ref.
    np.testing.assert_allclose(np.asarray(out), np.asarray(ref),
                               rtol=5e-2, atol=5e-2)
    print("KERNEL_OK")
</pallas_src>

<mosaic_0001>
module attributes {stable_mosaic.version = 11 : i64} {
  func.func @_fc_kernel(%arg0: i32, %arg1: memref<16x128xbf16, #tpu.memory_space<vmem>>, %arg2: memref<128x128xbf16, #tpu.memory_space<vmem>>, %arg3: memref<1x128xf32, #tpu.memory_space<vmem>>, %arg4: memref<16x128xf32, #tpu.memory_space<vmem>>) attributes {dimension_semantics = [#tpu.dimension_semantics<parallel>], iteration_bounds = array<i64: 1>, scalar_prefetch = 0 : i64, scratch_operands = 0 : i64, tpu.core_type = #tpu.core_type<tc>, window_params = [{pipeline_mode = #tpu.pipeline_mode<synchronous>, transform_indices = @transform_0, window_bounds = array<i64: 16, 128>}, {transform_indices = @transform_1, window_bounds = array<i64: 128, 128>}, {transform_indices = @transform_2, window_bounds = array<i64: 1, 128>}, {transform_indices = @transform_3, window_bounds = array<i64: 16, 128>}]} {
    %c0 = arith.constant 0 : index
    %c0_0 = arith.constant 0 : index
    %0 = vector.load %arg1[%c0, %c0_0] : memref<16x128xbf16, #tpu.memory_space<vmem>>, vector<16x128xbf16>
    %c0_1 = arith.constant 0 : index
    %c0_2 = arith.constant 0 : index
    %1 = vector.load %arg2[%c0_1, %c0_2] : memref<128x128xbf16, #tpu.memory_space<vmem>>, vector<128x128xbf16>
    %cst = arith.constant dense<0.000000e+00> : vector<16x128xf32>
    %2 = tpu.matmul %0, %1, %cst {dimension_numbers = #tpu.dot_dimension_numbers<[1], [0], [0], [1], [0, 0, 1, 1], [], []>} : vector<16x128xbf16>, vector<128x128xbf16>, vector<16x128xf32> -> vector<16x128xf32>
    %c0_3 = arith.constant 0 : index
    %c0_4 = arith.constant 0 : index
    %3 = vector.load %arg3[%c0_3, %c0_4] : memref<1x128xf32, #tpu.memory_space<vmem>>, vector<1x128xf32>
    %4 = vector.broadcast %3 : vector<1x128xf32> to vector<16x128xf32>
    %5 = arith.addf %2, %4 : vector<16x128xf32>
    %c0_5 = arith.constant 0 : index
    %c0_6 = arith.constant 0 : index
    %6 = vector.load %arg4[%c0_5, %c0_6] : memref<16x128xf32, #tpu.memory_space<vmem>>, vector<16x128xf32>
    tpu.vector_store %arg4[%c0_5, %c0_6], %5 {strides = array<i32>} : memref<16x128xf32, #tpu.memory_space<vmem>>, vector<16x128xf32>,
    return
  }
  func.func @transform_0(%arg0: i32) -> (i32, i32) {
    %c0_i32 = arith.constant 0 : i32
    %c0_i32_0 = arith.constant 0 : i32
    %c0_i32_1 = arith.constant 0 : i32
    return %c0_i32, %c0_i32_0 : i32, i32
  }
  func.func @transform_1(%arg0: i32) -> (i32, i32) {
    %c0_i32 = arith.constant 0 : i32
    %c0_i32_0 = arith.constant 0 : i32
    return %c0_i32, %arg0 : i32, i32
  }
  func.func @transform_2(%arg0: i32) -> (i32, i32) {
    %c0_i32 = arith.constant 0 : i32
    %c0_i32_0 = arith.constant 0 : i32
    return %c0_i32, %arg0 : i32, i32
  }
  func.func @transform_3(%arg0: i32) -> (i32, i32) {
    %c0_i32 = arith.constant 0 : i32
    %c0_i32_0 = arith.constant 0 : i32
    return %c0_i32, %arg0 : i32, i32
  }
}

module attributes {stable_mosaic.version = 11 : i64} {
  func.func @_lstm_chunk_kernel(%arg0: i32, %arg1: i32, %arg2: memref<1x128x128xbf16, #tpu.memory_space<vmem>>, %arg3: memref<128x512xbf16, #tpu.memory_space<any>>, %arg4: memref<128x512xbf16, #tpu.memory_space<any>>, %arg5: memref<1x512xf32, #tpu.memory_space<any>>, %arg6: memref<16x128xbf16, #tpu.memory_space<vmem>>, %arg7: memref<128x512xbf16, #tpu.memory_space<vmem>>, %arg8: memref<128x512xbf16, #tpu.memory_space<vmem>>, %arg9: memref<1x512xf32, #tpu.memory_space<vmem>>, %arg10: memref<16x128xbf16, #tpu.memory_space<vmem>>, %arg11: memref<16x128xf32, #tpu.memory_space<vmem>>, %arg12: memref<128x512xbf16, #tpu.memory_space<vmem>>, %arg13: memref<3x!tpu.dma_semaphore, #tpu.memory_space<semaphore_mem>>) attributes {dimension_semantics = [#tpu.dimension_semantics<parallel>, #tpu.dimension_semantics<arbitrary>], iteration_bounds = array<i64: 1, 1>, scalar_prefetch = 0 : i64, scratch_operands = 7 : i64, tpu.core_type = #tpu.core_type<tc>, window_params = [{transform_indices = @transform_0, window_bounds = array<i64: 1, 128, 128>}, {}, {}, {}, {transform_indices = @transform_4, window_bounds = array<i64: 16, 128>}]} {
    %c0_i32 = arith.constant 0 : i32
    %0 = arith.cmpi eq, %arg1, %c0_i32 : i32
    %1 = arith.extui %0 : i1 to i32
    %c0_i32_0 = arith.constant 0 : i32
    %2 = arith.cmpi ne, %1, %c0_i32_0 : i32
    scf.if %2 {
      %c0_i32_83 = arith.constant 0 : i32
      %289 = tpu.memref_slice %arg13[%c0_i32_83] : memref<3x!tpu.dma_semaphore, #tpu.memory_space<semaphore_mem>> -> memref<1x!tpu.dma_semaphore, #tpu.memory_space<semaphore_mem>>
      %290 = tpu.memref_squeeze %289 : memref<1x!tpu.dma_semaphore, #tpu.memory_space<semaphore_mem>> -> memref<!tpu.dma_semaphore, #tpu.memory_space<semaphore_mem>>
      tpu.enqueue_dma source(%arg3 : memref<128x512xbf16, #tpu.memory_space<any>>) target(%arg7 : memref<128x512xbf16, #tpu.memory_space<vmem>>) target_semaphore(%290 : memref<!tpu.dma_semaphore, #tpu.memory_space<semaphore_mem>>)
      %c1_i32_84 = arith.constant 1 : i32
      %291 = tpu.memref_slice %arg13[%c1_i32_84] : memref<3x!tpu.dma_semaphore, #tpu.memory_space<semaphore_mem>> -> memref<1x!tpu.dma_semaphore, #tpu.memory_space<semaphore_mem>>
      %292 = tpu.memref_squeeze %291 : memref<1x!tpu.dma_semaphore, #tpu.memory_space<semaphore_mem>> -> memref<!tpu.dma_semaphore, #tpu.memory_space<semaphore_mem>>
      tpu.enqueue_dma source(%arg4 : memref<128x512xbf16, #tpu.memory_space<any>>) target(%arg8 : memref<128x512xbf16, #tpu.memory_space<vmem>>) target_semaphore(%292 : memref<!tpu.dma_semaphore, #tpu.memory_space<semaphore_mem>>)
      %c2_i32_85 = arith.constant 2 : i32
      %293 = tpu.memref_slice %arg13[%c2_i32_85] : memref<3x!tpu.dma_semaphore, #tpu.memory_space<semaphore_mem>> -> memref<1x!tpu.dma_semaphore, #tpu.memory_space<semaphore_mem>>
      %294 = tpu.memref_squeeze %293 : memref<1x!tpu.dma_semaphore, #tpu.memory_space<semaphore_mem>> -> memref<!tpu.dma_semaphore, #tpu.memory_space<semaphore_mem>>
      tpu.enqueue_dma source(%arg5 : memref<1x512xf32, #tpu.memory_space<any>>) target(%arg9 : memref<1x512xf32, #tpu.memory_space<vmem>>) target_semaphore(%294 : memref<!tpu.dma_semaphore, #tpu.memory_space<semaphore_mem>>)
      %c0_i32_86 = arith.constant 0 : i32
      %295 = tpu.memref_slice %arg13[%c0_i32_86] : memref<3x!tpu.dma_semaphore, #tpu.memory_space<semaphore_mem>> -> memref<1x!tpu.dma_semaphore, #tpu.memory_space<semaphore_mem>>
      %296 = tpu.memref_squeeze %295 : memref<1x!tpu.dma_semaphore, #tpu.memory_space<semaphore_mem>> -> memref<!tpu.dma_semaphore, #tpu.memory_space<semaphore_mem>>
      tpu.wait_dma2 semaphore(%296 : memref<!tpu.dma_semaphore, #tpu.memory_space<semaphore_mem>>) src(%arg3 : memref<128x512xbf16, #tpu.memory_space<any>>) dst(%arg7 : memref<128x512xbf16, #tpu.memory_space<vmem>>)
      %c1_i32_87 = arith.constant 1 : i32
      %297 = tpu.memref_slice %arg13[%c1_i32_87] : memref<3x!tpu.dma_semaphore, #tpu.memory_space<semaphore_mem>> -> memref<1x!tpu.dma_semaphore, #tpu.memory_space<semaphore_mem>>
      %298 = tpu.memref_squeeze %297 : memref<1x!tpu.dma_semaphore, #tpu.memory_space<semaphore_mem>> -> memref<!tpu.dma_semaphore, #tpu.memory_space<semaphore_mem>>
      tpu.wait_dma2 semaphore(%298 : memref<!tpu.dma_semaphore, #tpu.memory_space<semaphore_mem>>) src(%arg4 : memref<128x512xbf16, #tpu.memory_space<any>>) dst(%arg8 : memref<128x512xbf16, #tpu.memory_space<vmem>>)
      %c2_i32_88 = arith.constant 2 : i32
      %299 = tpu.memref_slice %arg13[%c2_i32_88] : memref<3x!tpu.dma_semaphore, #tpu.memory_space<semaphore_mem>> -> memref<1x!tpu.dma_semaphore, #tpu.memory_space<semaphore_mem>>
      %300 = tpu.memref_squeeze %299 : memref<1x!tpu.dma_semaphore, #tpu.memory_space<semaphore_mem>> -> memref<!tpu.dma_semaphore, #tpu.memory_space<semaphore_mem>>
      tpu.wait_dma2 semaphore(%300 : memref<!tpu.dma_semaphore, #tpu.memory_space<semaphore_mem>>) src(%arg5 : memref<1x512xf32, #tpu.memory_space<any>>) dst(%arg9 : memref<1x512xf32, #tpu.memory_space<vmem>>)
      %cst_89 = arith.constant 0.000000e+00 : bf16
      %301 = vector.broadcast %cst_89 : bf16 to vector<16x128xbf16>
      %c0_90 = arith.constant 0 : index
      %c0_91 = arith.constant 0 : index
      %302 = vector.load %arg10[%c0_90, %c0_91] : memref<16x128xbf16, #tpu.memory_space<vmem>>, vector<16x128xbf16>
      tpu.vector_store %arg10[%c0_90, %c0_91], %301 {strides = array<i32>} : memref<16x128xbf16, #tpu.memory_space<vmem>>, vector<16x128xbf16>,
      %cst_92 = arith.constant 0.000000e+00 : f32
      %303 = vector.broadcast %cst_92 : f32 to vector<16x128xf32>
      %c0_93 = arith.constant 0 : index
      %c0_94 = arith.constant 0 : index
      %304 = vector.load %arg11[%c0_93, %c0_94] : memref<16x128xf32, #tpu.memory_space<vmem>>, vector<16x128xf32>
      tpu.vector_store %arg11[%c0_93, %c0_94], %303 {strides = array<i32>} : memref<16x128xf32, #tpu.memory_space<vmem>>, vector<16x128xf32>,
    } else {
    }
    %c0 = arith.constant 0 : index
    %c0_1 = arith.constant 0 : index
    %c0_2 = arith.constant 0 : index
    %3 = vector.load %arg2[%c0, %c0_1, %c0_2] : memref<1x128x128xbf16, #tpu.memory_space<vmem>>, vector<1x128x128xbf16>
    %4 = vector.shape_cast %3 : vector<1x128x128xbf16> to vector<128x128xbf16>
    %c0_3 = arith.constant 0 : index
    %c0_4 = arith.constant 0 : index
    %5 = vector.load %arg7[%c0_3, %c0_4] : memref<128x512xbf16, #tpu.memory_space<vmem>>, vector<128x512xbf16>
    %cst = arith.constant dense<0.000000e+00> : vector<128x512xf32>
    %6 = tpu.matmul %4, %5, %cst {dimension_numbers = #tpu.dot_dimension_numbers<[1], [0], [0], [1], [0, 0, 1, 1], [], []>} : vector<128x128xbf16>, vector<128x512xbf16>, vector<128x512xf32> -> vector<128x512xf32>
    %c0_5 = arith.constant 0 : index
    %c0_6 = arith.constant 0 : index
    %7 = vector.load %arg9[%c0_5, %c0_6] : memref<1x512xf32, #tpu.memory_space<vmem>>, vector<1x512xf32>
    %8 = vector.broadcast %7 : vector<1x512xf32> to vector<128x512xf32>
    %9 = arith.addf %6, %8 : vector<128x512xf32>
    %10 = arith.truncf %9 : vector<128x512xf32> to vector<128x512xbf16>
    %c0_7 = arith.constant 0 : index
    %c0_8 = arith.constant 0 : index
    %11 = vector.load %arg12[%c0_7, %c0_8] : memref<128x512xbf16, #tpu.memory_space<vmem>>, vector<128x512xbf16>
    tpu.vector_store %arg12[%c0_7, %c0_8], %10 {strides = array<i32>} : memref<128x512xbf16, #tpu.memory_space<vmem>>, vector<128x512xbf16>,
    %c0_9 = arith.constant 0 : index
    %c0_10 = arith.constant 0 : index
    %12 = vector.load %arg10[%c0_9, %c0_10] : memref<16x128xbf16, #tpu.memory_space<vmem>>, vector<16x128xbf16>
    %c0_11 = arith.constant 0 : index
    %c0_12 = arith.constant 0 : index
    %13 = vector.load %arg11[%c0_11, %c0_12] : memref<16x128xf32, #tpu.memory_space<vmem>>, vector<16x128xf32>
    %c0_i32_13 = arith.constant 0 : i32
    %c16_i32 = arith.constant 16 : i32
    %14 = arith.muli %c0_i32_13, %c16_i32 : i32
    %15 = tpu.assume_multiple %14, 16 : i32
    %16 = arith.index_cast %15 : i32 to index
    %c0_14 = arith.constant 0 : index
    %17 = vector.load %arg12[%16, %c0_14] : memref<128x512xbf16, #tpu.memory_space<vmem>>, vector<16x512xbf16>
    %18 = arith.extf %17 : vector<16x512xbf16> to vector<16x512xf32>
    %c0_15 = arith.constant 0 : index
    %c0_16 = arith.constant 0 : index
    %19 = vector.load %arg8[%c0_15, %c0_16] : memref<128x512xbf16, #tpu.memory_space<vmem>>, vector<128x512xbf16>
    %cst_17 = arith.constant dense<0.000000e+00> : vector<16x512xf32>
    %20 = tpu.matmul %12, %19, %cst_17 {dimension_numbers = #tpu.dot_dimension_numbers<[1], [0], [0], [1], [0, 0, 1, 1], [], []>} : vector<16x128xbf16>, vector<128x512xbf16>, vector<16x512xf32> -> vector<16x512xf32>
    %21 = arith.addf %18, %20 : vector<16x512xf32>
    %22 = vector.extract_strided_slice %21 {offsets = [0, 0], sizes = [16, 128], strides = [1, 1]} : vector<16x512xf32> to vector<16x128xf32>
    %23 = arith.negf %22 : vector<16x128xf32>
    %24 = math.exp %23 : vector<16x128xf32>
    %cst_18 = arith.constant 1.000000e+00 : f32
    %25 = vector.broadcast %cst_18 : f32 to vector<16x128xf32>
    %26 = arith.addf %25, %24 : vector<16x128xf32>
    %27 = arith.divf %25, %26 : vector<16x128xf32>
    %28 = vector.extract_strided_slice %21 {offsets = [0, 128], sizes = [16, 128], strides = [1, 1]} : vector<16x512xf32> to vector<16x128xf32>
    %29 = arith.negf %28 : vector<16x128xf32>
    %30 = math.exp %29 : vector<16x128xf32>
    %cst_19 = arith.constant 1.000000e+00 : f32
    %31 = vector.broadcast %cst_19 : f32 to vector<16x128xf32>
    %32 = arith.addf %31, %30 : vector<16x128xf32>
    %33 = arith.divf %31, %32 : vector<16x128xf32>
    %34 = vector.extract_strided_slice %21 {offsets = [0, 256], sizes = [16, 128], strides = [1, 1]} : vector<16x512xf32> to vector<16x128xf32>
    %35 = math.tanh %34 : vector<16x128xf32>
    %36 = vector.extract_strided_slice %21 {offsets = [0, 384], sizes = [16, 128], strides = [1, 1]} : vector<16x512xf32> to vector<16x128xf32>
    %37 = arith.negf %36 : vector<16x128xf32>
    %38 = math.exp %37 : vector<16x128xf32>
    %cst_20 = arith.constant 1.000000e+00 : f32
    %39 = vector.broadcast %cst_20 : f32 to vector<16x128xf32>
    %40 = arith.addf %39, %38 : vector<16x128xf32>
    %41 = arith.divf %39, %40 : vector<16x128xf32>
    %42 = arith.mulf %33, %13 : vector<16x128xf32>
    %43 = arith.mulf %27, %35 : vector<16x128xf32>
    %44 = arith.addf %42, %43 : vector<16x128xf32>
    %45 = math.tanh %44 : vector<16x128xf32>
    %46 = arith.mulf %41, %45 : vector<16x128xf32>
    %47 = arith.truncf %46 : vector<16x128xf32> to vector<16x128xbf16>
    %c1_i32 = arith.constant 1 : i32
    %c16_i32_21 = arith.constant 16 : i32
    %48 = arith.muli %c1_i32, %c16_i32_21 : i32
    %49 = tpu.assume_multiple %48, 16 : i32
    %50 = arith.index_cast %49 : i32 to index
    %c0_22 = arith.constant 0 : index
    %51 = vector.load %arg12[%50, %c0_22] : memref<128x512xbf16, #tpu.memory_space<vmem>>, vector<16x512xbf16>
    %52 = arith.extf %51 : vector<16x512xbf16> to vector<16x512xf32>
    %c0_23 = arith.constant 0 : index
    %c0_24 = arith.constant 0 : index
    %53 = vector.load %arg8[%c0_23, %c0_24] : memref<128x512xbf16, #tpu.memory_space<vmem>>, vector<128x512xbf16>
    %cst_25 = arith.constant dense<0.000000e+00> : vector<16x512xf32>
    %54 = tpu.matmul %47, %53, %cst_25 {dimension_numbers = #tpu.dot_dimension_numbers<[1], [0], [0], [1], [0, 0, 1, 1], [], []>} : vector<16x128xbf16>, vector<128x512xbf16>, vector<16x512xf32> -> vector<16x512xf32>
    %55 = arith.addf %52, %54 : vector<16x512xf32>
    %56 = vector.extract_strided_slice %55 {offsets = [0, 0], sizes = [16, 128], strides = [1, 1]} : vector<16x512xf32> to vector<16x128xf32>
    %57 = arith.negf %56 : vector<16x128xf32>
    %58 = math.exp %57 : vector<16x128xf32>
    %cst_26 = arith.constant 1.000000e+00 : f32
    %59 = vector.broadcast %cst_26 : f32 to vector<16x128xf32>
    %60 = arith.addf %59, %58 : vector<16x128xf32>
    %61 = arith.divf %59, %60 : vector<16x128xf32>
    %62 = vector.extract_strided_slice %55 {offsets = [0, 128], sizes = [16, 128], strides = [1, 1]} : vector<16x512xf32> to vector<16x128xf32>
    %63 = arith.negf %62 : vector<16x128xf32>
    %64 = math.exp %63 : vector<16x128xf32>
    %cst_27 = arith.constant 1.000000e+00 : f32
    %65 = vector.broadcast %cst_27 : f32 to vector<16x128xf32>
    %66 = arith.addf %65, %64 : vector<16x128xf32>
    %67 = arith.divf %65, %66 : vector<16x128xf32>
    %68 = vector.extract_strided_slice %55 {offsets = [0, 256], sizes = [16, 128], strides = [1, 1]} : vector<16x512xf32> to vector<16x128xf32>
    %69 = math.tanh %68 : vector<16x128xf32>
    %70 = vector.extract_strided_slice %55 {offsets = [0, 384], sizes = [16, 128], strides = [1, 1]} : vector<16x512xf32> to vector<16x128xf32>
    %71 = arith.negf %70 : vector<16x128xf32>
    %72 = math.exp %71 : vector<16x128xf32>
    %cst_28 = arith.constant 1.000000e+00 : f32
    %73 = vector.broadcast %cst_28 : f32 to vector<16x128xf32>
    %74 = arith.addf %73, %72 : vector<16x128xf32>
    %75 = arith.divf %73, %74 : vector<16x128xf32>
    %76 = arith.mulf %67, %44 : vector<16x128xf32>
    %77 = arith.mulf %61, %69 : vector<16x128xf32>
    %78 = arith.addf %76, %77 : vector<16x128xf32>
    %79 = math.tanh %78 : vector<16x128xf32>
    %80 = arith.mulf %75, %79 : vector<16x128xf32>
    %81 = arith.truncf %80 : vector<16x128xf32> to vector<16x128xbf16>
    %c2_i32 = arith.constant 2 : i32
    %c16_i32_29 = arith.constant 16 : i32
    %82 = arith.muli %c2_i32, %c16_i32_29 : i32
    %83 = tpu.assume_multiple %82, 16 : i32
    %84 = arith.index_cast %83 : i32 to index
    %c0_30 = arith.constant 0 : index
    %85 = vector.load %arg12[%84, %c0_30] : memref<128x512xbf16, #tpu.memory_space<vmem>>, vector<16x512xbf16>
    %86 = arith.extf %85 : vector<16x512xbf16> to vector<16x512xf32>
    %c0_31 = arith.constant 0 : index
    %c0_32 = arith.constant 0 : index
    %87 = vector.load %arg8[%c0_31, %c0_32] : memref<128x512xbf16, #tpu.memory_space<vmem>>, vector<128x512xbf16>
    %cst_33 = arith.constant dense<0.000000e+00> : vector<16x512xf32>
    %88 = tpu.matmul %81, %87, %cst_33 {dimension_numbers = #tpu.dot_dimension_numbers<[1], [0], [0], [1], [0, 0, 1, 1], [], []>} : vector<16x128xbf16>, vector<128x512xbf16>, vector<16x512xf32> -> vector<16x512xf32>
    %89 = arith.addf %86, %88 : vector<16x512xf32>
    %90 = vector.extract_strided_slice %89 {offsets = [0, 0], sizes = [16, 128], strides = [1, 1]} : vector<16x512xf32> to vector<16x128xf32>
    %91 = arith.negf %90 : vector<16x128xf32>
    %92 = math.exp %91 : vector<16x128xf32>
    %cst_34 = arith.constant 1.000000e+00 : f32
    %93 = vector.broadcast %cst_34 : f32 to vector<16x128xf32>
    %94 = arith.addf %93, %92 : vector<16x128xf32>
    %95 = arith.divf %93, %94 : vector<16x128xf32>
    %96 = vector.extract_strided_slice %89 {offsets = [0, 128], sizes = [16, 128], strides = [1, 1]} : vector<16x512xf32> to vector<16x128xf32>
    %97 = arith.negf %96 : vector<16x128xf32>
    %98 = math.exp %97 : vector<16x128xf32>
    %cst_35 = arith.constant 1.000000e+00 : f32
    %99 = vector.broadcast %cst_35 : f32 to vector<16x128xf32>
    %100 = arith.addf %99, %98 : vector<16x128xf32>
    %101 = arith.divf %99, %100 : vector<16x128xf32>
    %102 = vector.extract_strided_slice %89 {offsets = [0, 256], sizes = [16, 128], strides = [1, 1]} : vector<16x512xf32> to vector<16x128xf32>
    %103 = math.tanh %102 : vector<16x128xf32>
    %104 = vector.extract_strided_slice %89 {offsets = [0, 384], sizes = [16, 128], strides = [1, 1]} : vector<16x512xf32> to vector<16x128xf32>
    %105 = arith.negf %104 : vector<16x128xf32>
    %106 = math.exp %105 : vector<16x128xf32>
    %cst_36 = arith.constant 1.000000e+00 : f32
    %107 = vector.broadcast %cst_36 : f32 to vector<16x128xf32>
    %108 = arith.addf %107, %106 : vector<16x128xf32>
    %109 = arith.divf %107, %108 : vector<16x128xf32>
    %110 = arith.mulf %101, %78 : vector<16x128xf32>
    %111 = arith.mulf %95, %103 : vector<16x128xf32>
    %112 = arith.addf %110, %111 : vector<16x128xf32>
    %113 = math.tanh %112 : vector<16x128xf32>
    %114 = arith.mulf %109, %113 : vector<16x128xf32>
    %115 = arith.truncf %114 : vector<16x128xf32> to vector<16x128xbf16>
    %c3_i32 = arith.constant 3 : i32
    %c16_i32_37 = arith.constant 16 : i32
    %116 = arith.muli %c3_i32, %c16_i32_37 : i32
    %117 = tpu.assume_multiple %116, 16 : i32
    %118 = arith.index_cast %117 : i32 to index
    %c0_38 = arith.constant 0 : index
    %119 = vector.load %arg12[%118, %c0_38] : memref<128x512xbf16, #tpu.memory_space<vmem>>, vector<16x512xbf16>
    %120 = arith.extf %119 : vector<16x512xbf16> to vector<16x512xf32>
    %c0_39 = arith.constant 0 : index
    %c0_40 = arith.constant 0 : index
    %121 = vector.load %arg8[%c0_39, %c0_40] : memref<128x512xbf16, #tpu.memory_space<vmem>>, vector<128x512xbf16>
    %cst_41 = arith.constant dense<0.000000e+00> : vector<16x512xf32>
    %122 = tpu.matmul %115, %121, %cst_41 {dimension_numbers = #tpu.dot_dimension_numbers<[1], [0], [0], [1], [0, 0, 1, 1], [], []>} : vector<16x128xbf16>, vector<128x512xbf16>, vector<16x512xf32> -> vector<16x512xf32>
    %123 = arith.addf %120, %122 : vector<16x512xf32>
    %124 = vector.extract_strided_slice %123 {offsets = [0, 0], sizes = [16, 128], strides = [1, 1]} : vector<16x512xf32> to vector<16x128xf32>
    %125 = arith.negf %124 : vector<16x128xf32>
    %126 = math.exp %125 : vector<16x128xf32>
    %cst_42 = arith.constant 1.000000e+00 : f32
    %127 = vector.broadcast %cst_42 : f32 to vector<16x128xf32>
    %128 = arith.addf %127, %126 : vector<16x128xf32>
    %129 = arith.divf %127, %128 : vector<16x128xf32>
    %130 = vector.extract_strided_slice %123 {offsets = [0, 128], sizes = [16, 128], strides = [1, 1]} : vector<16x512xf32> to vector<16x128xf32>
    %131 = arith.negf %130 : vector<16x128xf32>
    %132 = math.exp %131 : vector<16x128xf32>
    %cst_43 = arith.constant 1.000000e+00 : f32
    %133 = vector.broadcast %cst_43 : f32 to vector<16x128xf32>
    %134 = arith.addf %133, %132 : vector<16x128xf32>
    %135 = arith.divf %133, %134 : vector<16x128xf32>
    %136 = vector.extract_strided_slice %123 {offsets = [0, 256], sizes = [16, 128], strides = [1, 1]} : vector<16x512xf32> to vector<16x128xf32>
    %137 = math.tanh %136 : vector<16x128xf32>
    %138 = vector.extract_strided_slice %123 {offsets = [0, 384], sizes = [16, 128], strides = [1, 1]} : vector<16x512xf32> to vector<16x128xf32>
    %139 = arith.negf %138 : vector<16x128xf32>
    %140 = math.exp %139 : vector<16x128xf32>
    %cst_44 = arith.constant 1.000000e+00 : f32
    %141 = vector.broadcast %cst_44 : f32 to vector<16x128xf32>
    %142 = arith.addf %141, %140 : vector<16x128xf32>
    %143 = arith.divf %141, %142 : vector<16x128xf32>
    %144 = arith.mulf %135, %112 : vector<16x128xf32>
    %145 = arith.mulf %129, %137 : vector<16x128xf32>
    %146 = arith.addf %144, %145 : vector<16x128xf32>
    %147 = math.tanh %146 : vector<16x128xf32>
    %148 = arith.mulf %143, %147 : vector<16x128xf32>
    %149 = arith.truncf %148 : vector<16x128xf32> to vector<16x128xbf16>
    %c4_i32 = arith.constant 4 : i32
    %c16_i32_45 = arith.constant 16 : i32
    %150 = arith.muli %c4_i32, %c16_i32_45 : i32
    %151 = tpu.assume_multiple %150, 16 : i32
    %152 = arith.index_cast %151 : i32 to index
    %c0_46 = arith.constant 0 : index
    %153 = vector.load %arg12[%152, %c0_46] : memref<128x512xbf16, #tpu.memory_space<vmem>>, vector<16x512xbf16>
    %154 = arith.extf %153 : vector<16x512xbf16> to vector<16x512xf32>
    %c0_47 = arith.constant 0 : index
    %c0_48 = arith.constant 0 : index
    %155 = vector.load %arg8[%c0_47, %c0_48] : memref<128x512xbf16, #tpu.memory_space<vmem>>, vector<128x512xbf16>
    %cst_49 = arith.constant dense<0.000000e+00> : vector<16x512xf32>
    %156 = tpu.matmul %149, %155, %cst_49 {dimension_numbers = #tpu.dot_dimension_numbers<[1], [0], [0], [1], [0, 0, 1, 1], [], []>} : vector<16x128xbf16>, vector<128x512xbf16>, vector<16x512xf32> -> vector<16x512xf32>
    %157 = arith.addf %154, %156 : vector<16x512xf32>
    %158 = vector.extract_strided_slice %157 {offsets = [0, 0], sizes = [16, 128], strides = [1, 1]} : vector<16x512xf32> to vector<16x128xf32>
    %159 = arith.negf %158 : vector<16x128xf32>
    %160 = math.exp %159 : vector<16x128xf32>
    %cst_50 = arith.constant 1.000000e+00 : f32
    %161 = vector.broadcast %cst_50 : f32 to vector<16x128xf32>
    %162 = arith.addf %161, %160 : vector<16x128xf32>
    %163 = arith.divf %161, %162 : vector<16x128xf32>
    %164 = vector.extract_strided_slice %157 {offsets = [0, 128], sizes = [16, 128], strides = [1, 1]} : vector<16x512xf32> to vector<16x128xf32>
    %165 = arith.negf %164 : vector<16x128xf32>
    %166 = math.exp %165 : vector<16x128xf32>
    %cst_51 = arith.constant 1.000000e+00 : f32
    %167 = vector.broadcast %cst_51 : f32 to vector<16x128xf32>
    %168 = arith.addf %167, %166 : vector<16x128xf32>
    %169 = arith.divf %167, %168 : vector<16x128xf32>
    %170 = vector.extract_strided_slice %157 {offsets = [0, 256], sizes = [16, 128], strides = [1, 1]} : vector<16x512xf32> to vector<16x128xf32>
    %171 = math.tanh %170 : vector<16x128xf32>
    %172 = vector.extract_strided_slice %157 {offsets = [0, 384], sizes = [16, 128], strides = [1, 1]} : vector<16x512xf32> to vector<16x128xf32>
    %173 = arith.negf %172 : vector<16x128xf32>
    %174 = math.exp %173 : vector<16x128xf32>
    %cst_52 = arith.constant 1.000000e+00 : f32
    %175 = vector.broadcast %cst_52 : f32 to vector<16x128xf32>
    %176 = arith.addf %175, %174 : vector<16x128xf32>
    %177 = arith.divf %175, %176 : vector<16x128xf32>
    %178 = arith.mulf %169, %146 : vector<16x128xf32>
    %179 = arith.mulf %163, %171 : vector<16x128xf32>
    %180 = arith.addf %178, %179 : vector<16x128xf32>
    %181 = math.tanh %180 : vector<16x128xf32>
    %182 = arith.mulf %177, %181 : vector<16x128xf32>
    %183 = arith.truncf %182 : vector<16x128xf32> to vector<16x128xbf16>
    %c5_i32 = arith.constant 5 : i32
    %c16_i32_53 = arith.constant 16 : i32
    %184 = arith.muli %c5_i32, %c16_i32_53 : i32
    %185 = tpu.assume_multiple %184, 16 : i32
    %186 = arith.index_cast %185 : i32 to index
    %c0_54 = arith.constant 0 : index
    %187 = vector.load %arg12[%186, %c0_54] : memref<128x512xbf16, #tpu.memory_space<vmem>>, vector<16x512xbf16>
    %188 = arith.extf %187 : vector<16x512xbf16> to vector<16x512xf32>
    %c0_55 = arith.constant 0 : index
    %c0_56 = arith.constant 0 : index
    %189 = vector.load %arg8[%c0_55, %c0_56] : memref<128x512xbf16, #tpu.memory_space<vmem>>, vector<128x512xbf16>
    %cst_57 = arith.constant dense<0.000000e+00> : vector<16x512xf32>
    %190 = tpu.matmul %183, %189, %cst_57 {dimension_numbers = #tpu.dot_dimension_numbers<[1], [0], [0], [1], [0, 0, 1, 1], [], []>} : vector<16x128xbf16>, vector<128x512xbf16>, vector<16x512xf32> -> vector<16x512xf32>
    %191 = arith.addf %188, %190 : vector<16x512xf32>
    %192 = vector.extract_strided_slice %191 {offsets = [0, 0], sizes = [16, 128], strides = [1, 1]} : vector<16x512xf32> to vector<16x128xf32>
    %193 = arith.negf %192 : vector<16x128xf32>
    %194 = math.exp %193 : vector<16x128xf32>
    %cst_58 = arith.constant 1.000000e+00 : f32
    %195 = vector.broadcast %cst_58 : f32 to vector<16x128xf32>
    %196 = arith.addf %195, %194 : vector<16x128xf32>
    %197 = arith.divf %195, %196 : vector<16x128xf32>
    %198 = vector.extract_strided_slice %191 {offsets = [0, 128], sizes = [16, 128], strides = [1, 1]} : vector<16x512xf32> to vector<16x128xf32>
    %199 = arith.negf %198 : vector<16x128xf32>
    %200 = math.exp %199 : vector<16x128xf32>
    %cst_59 = arith.constant 1.000000e+00 : f32
    %201 = vector.broadcast %cst_59 : f32 to vector<16x128xf32>
    %202 = arith.addf %201, %200 : vector<16x128xf32>
    %203 = arith.divf %201, %202 : vector<16x128xf32>
    %204 = vector.extract_strided_slice %191 {offsets = [0, 256], sizes = [16, 128], strides = [1, 1]} : vector<16x512xf32> to vector<16x128xf32>
    %205 = math.tanh %204 : vector<16x128xf32>
    %206 = vector.extract_strided_slice %191 {offsets = [0, 384], sizes = [16, 128], strides = [1, 1]} : vector<16x512xf32> to vector<16x128xf32>
    %207 = arith.negf %206 : vector<16x128xf32>
    %208 = math.exp %207 : vector<16x128xf32>
    %cst_60 = arith.constant 1.000000e+00 : f32
    %209 = vector.broadcast %cst_60 : f32 to vector<16x128xf32>
    %210 = arith.addf %209, %208 : vector<16x128xf32>
    %211 = arith.divf %209, %210 : vector<16x128xf32>
    %212 = arith.mulf %203, %180 : vector<16x128xf32>
    %213 = arith.mulf %197, %205 : vector<16x128xf32>
    %214 = arith.addf %212, %213 : vector<16x128xf32>
    %215 = math.tanh %214 : vector<16x128xf32>
    %216 = arith.mulf %211, %215 : vector<16x128xf32>
    %217 = arith.truncf %216 : vector<16x128xf32> to vector<16x128xbf16>
    %c6_i32 = arith.constant 6 : i32
    %c16_i32_61 = arith.constant 16 : i32
    %218 = arith.muli %c6_i32, %c16_i32_61 : i32
    %219 = tpu.assume_multiple %218, 16 : i32
    %220 = arith.index_cast %219 : i32 to index
    %c0_62 = arith.constant 0 : index
    %221 = vector.load %arg12[%220, %c0_62] : memref<128x512xbf16, #tpu.memory_space<vmem>>, vector<16x512xbf16>
    %222 = arith.extf %221 : vector<16x512xbf16> to vector<16x512xf32>
    %c0_63 = arith.constant 0 : index
    %c0_64 = arith.constant 0 : index
    %223 = vector.load %arg8[%c0_63, %c0_64] : memref<128x512xbf16, #tpu.memory_space<vmem>>, vector<128x512xbf16>
    %cst_65 = arith.constant dense<0.000000e+00> : vector<16x512xf32>
    %224 = tpu.matmul %217, %223, %cst_65 {dimension_numbers = #tpu.dot_dimension_numbers<[1], [0], [0], [1], [0, 0, 1, 1], [], []>} : vector<16x128xbf16>, vector<128x512xbf16>, vector<16x512xf32> -> vector<16x512xf32>
    %225 = arith.addf %222, %224 : vector<16x512xf32>
    %226 = vector.extract_strided_slice %225 {offsets = [0, 0], sizes = [16, 128], strides = [1, 1]} : vector<16x512xf32> to vector<16x128xf32>
    %227 = arith.negf %226 : vector<16x128xf32>
    %228 = math.exp %227 : vector<16x128xf32>
    %cst_66 = arith.constant 1.000000e+00 : f32
    %229 = vector.broadcast %cst_66 : f32 to vector<16x128xf32>
    %230 = arith.addf %229, %228 : vector<16x128xf32>
    %231 = arith.divf %229, %230 : vector<16x128xf32>
    %232 = vector.extract_strided_slice %225 {offsets = [0, 128], sizes = [16, 128], strides = [1, 1]} : vector<16x512xf32> to vector<16x128xf32>
    %233 = arith.negf %232 : vector<16x128xf32>
    %234 = math.exp %233 : vector<16x128xf32>
    %cst_67 = arith.constant 1.000000e+00 : f32
    %235 = vector.broadcast %cst_67 : f32 to vector<16x128xf32>
    %236 = arith.addf %235, %234 : vector<16x128xf32>
    %237 = arith.divf %235, %236 : vector<16x128xf32>
    %238 = vector.extract_strided_slice %225 {offsets = [0, 256], sizes = [16, 128], strides = [1, 1]} : vector<16x512xf32> to vector<16x128xf32>
    %239 = math.tanh %238 : vector<16x128xf32>
    %240 = vector.extract_strided_slice %225 {offsets = [0, 384], sizes = [16, 128], strides = [1, 1]} : vector<16x512xf32> to vector<16x128xf32>
    %241 = arith.negf %240 : vector<16x128xf32>
    %242 = math.exp %241 : vector<16x128xf32>
    %cst_68 = arith.constant 1.000000e+00 : f32
    %243 = vector.broadcast %cst_68 : f32 to vector<16x128xf32>
    %244 = arith.addf %243, %242 : vector<16x128xf32>
    %245 = arith.divf %243, %244 : vector<16x128xf32>
    %246 = arith.mulf %237, %214 : vector<16x128xf32>
    %247 = arith.mulf %231, %239 : vector<16x128xf32>
    %248 = arith.addf %246, %247 : vector<16x128xf32>
    %249 = math.tanh %248 : vector<16x128xf32>
    %250 = arith.mulf %245, %249 : vector<16x128xf32>
    %251 = arith.truncf %250 : vector<16x128xf32> to vector<16x128xbf16>
    %c7_i32 = arith.constant 7 : i32
    %c16_i32_69 = arith.constant 16 : i32
    %252 = arith.muli %c7_i32, %c16_i32_69 : i32
    %253 = tpu.assume_multiple %252, 16 : i32
    %254 = arith.index_cast %253 : i32 to index
    %c0_70 = arith.constant 0 : index
    %255 = vector.load %arg12[%254, %c0_70] : memref<128x512xbf16, #tpu.memory_space<vmem>>, vector<16x512xbf16>
    %256 = arith.extf %255 : vector<16x512xbf16> to vector<16x512xf32>
    %c0_71 = arith.constant 0 : index
    %c0_72 = arith.constant 0 : index
    %257 = vector.load %arg8[%c0_71, %c0_72] : memref<128x512xbf16, #tpu.memory_space<vmem>>, vector<128x512xbf16>
    %cst_73 = arith.constant dense<0.000000e+00> : vector<16x512xf32>
    %258 = tpu.matmul %251, %257, %cst_73 {dimension_numbers = #tpu.dot_dimension_numbers<[1], [0], [0], [1], [0, 0, 1, 1], [], []>} : vector<16x128xbf16>, vector<128x512xbf16>, vector<16x512xf32> -> vector<16x512xf32>
    %259 = arith.addf %256, %258 : vector<16x512xf32>
    %260 = vector.extract_strided_slice %259 {offsets = [0, 0], sizes = [16, 128], strides = [1, 1]} : vector<16x512xf32> to vector<16x128xf32>
    %261 = arith.negf %260 : vector<16x128xf32>
    %262 = math.exp %261 : vector<16x128xf32>
    %cst_74 = arith.constant 1.000000e+00 : f32
    %263 = vector.broadcast %cst_74 : f32 to vector<16x128xf32>
    %264 = arith.addf %263, %262 : vector<16x128xf32>
    %265 = arith.divf %263, %264 : vector<16x128xf32>
    %266 = vector.extract_strided_slice %259 {offsets = [0, 128], sizes = [16, 128], strides = [1, 1]} : vector<16x512xf32> to vector<16x128xf32>
    %267 = arith.negf %266 : vector<16x128xf32>
    %268 = math.exp %267 : vector<16x128xf32>
    %cst_75 = arith.constant 1.000000e+00 : f32
    %269 = vector.broadcast %cst_75 : f32 to vector<16x128xf32>
    %270 = arith.addf %269, %268 : vector<16x128xf32>
    %271 = arith.divf %269, %270 : vector<16x128xf32>
    %272 = vector.extract_strided_slice %259 {offsets = [0, 256], sizes = [16, 128], strides = [1, 1]} : vector<16x512xf32> to vector<16x128xf32>
    %273 = math.tanh %272 : vector<16x128xf32>
    %274 = vector.extract_strided_slice %259 {offsets = [0, 384], sizes = [16, 128], strides = [1, 1]} : vector<16x512xf32> to vector<16x128xf32>
    %275 = arith.negf %274 : vector<16x128xf32>
    %276 = math.exp %275 : vector<16x128xf32>
    %cst_76 = arith.constant 1.000000e+00 : f32
    %277 = vector.broadcast %cst_76 : f32 to vector<16x128xf32>
    %278 = arith.addf %277, %276 : vector<16x128xf32>
    %279 = arith.divf %277, %278 : vector<16x128xf32>
    %280 = arith.mulf %271, %248 : vector<16x128xf32>
    %281 = arith.mulf %265, %273 : vector<16x128xf32>
    %282 = arith.addf %280, %281 : vector<16x128xf32>
    %283 = math.tanh %282 : vector<16x128xf32>
    %284 = arith.mulf %279, %283 : vector<16x128xf32>
    %285 = arith.truncf %284 : vector<16x128xf32> to vector<16x128xbf16>
    %c8_i32 = arith.constant 8 : i32
    %c0_77 = arith.constant 0 : index
    %c0_78 = arith.constant 0 : index
    %286 = vector.load %arg10[%c0_77, %c0_78] : memref<16x128xbf16, #tpu.memory_space<vmem>>, vector<16x128xbf16>
    tpu.vector_store %arg10[%c0_77, %c0_78], %285 {strides = array<i32>} : memref<16x128xbf16, #tpu.memory_space<vmem>>, vector<16x128xbf16>,
    %c0_79 = arith.constant 0 : index
    %c0_80 = arith.constant 0 : index
    %287 = vector.load %arg11[%c0_79, %c0_80] : memref<16x128xf32, #tpu.memory_space<vmem>>, vector<16x128xf32>
    tpu.vector_store %arg11[%c0_79, %c0_80], %282 {strides = array<i32>} : memref<16x128xf32, #tpu.memory_space<vmem>>, vector<16x128xf32>,
    %c0_81 = arith.constant 0 : index
    %c0_82 = arith.constant 0 : index
    %288 = vector.load %arg6[%c0_81, %c0_82] : memref<16x128xbf16, #tpu.memory_space<vmem>>, vector<16x128xbf16>
    tpu.vector_store %arg6[%c0_81, %c0_82], %285 {strides = array<i32>} : memref<16x128xbf16, #tpu.memory_space<vmem>>, vector<16x128xbf16>,
    return
  }
  func.func @transform_0(%arg0: i32, %arg1: i32) -> (i32, i32, i32) {
    %c0_i32 = arith.constant 0 : i32
    %c0_i32_0 = arith.constant 0 : i32
    return %arg0, %arg1, %c0_i32 : i32, i32, i32
  }
  func.func @transform_4(%arg0: i32, %arg1: i32) -> (i32, i32) {
    %c0_i32 = arith.constant 0 : i32
    %c0_i32_0 = arith.constant 0 : i32
    return %arg0, %c0_i32 : i32, i32
  }
}

</mosaic_0001>

<bundles_post_ra>
// kernel: lstm_forward_prepared.3
= control target key start
LH: loop header
LB: loop body
LE: loop exit
PB: predicated region body
PF: predicated region fallthrough
CT: control target
= control target key end

     0   :  { %v191_v0 = vmov 0.0   ;;  %vm192_vm0 = vmmov 0   ;;  %s249_s1 = inlined_call_operand.vmem [shape: bf16[128,128], index: 1, kind: input, shape index: {}]   ;;  %s250_s0 = inlined_call_operand.vmem [shape: bf16[16,128], index: 0, kind: input, shape index: {}]   ;;  %s251_s2 = inlined_call_operand.vmem [shape: f32[1,128], index: 2, kind: input, shape index: {}]   ;;  %s252_s3 = inlined_call_operand.vmem [shape: f32[16,128], index: 3, kind: output, shape index: {}]  }
   0x1   :  { %160 = vmatprep.subr.bf16.mxu0 %v191_v0  ;;  %v182_v1 = vld [vmem:[%s249_s1 + $0x38] sm:$0xff]   ;;  %176 = vmatprep.mubr.msk.bf16.mxu0 %vm192_vm0, %v191_v0  ;;  %v183_v2 = vld [vmem:[%s249_s1 + $0x30] sm:$0xff]   ;;  %v184_v3 = vld [vmem:[%s249_s1 + $0x28] sm:$0xff]  }
   0x2   :  { %161 = vmatpush3.bf16.msra.mxu0 %v182_v1  ;;  %v185_v4 = vld [vmem:[%s249_s1 + $0x20] sm:$0xff]   ;;  %v186_v5 = vld [vmem:[%s249_s1 + $0x18] sm:$0xff]   ;;  %v187_v6 = vld [vmem:[%s249_s1 + $0x10] sm:$0xff]  }
   0x3   :  { %162 = vmatprep.subr.bf16.mxu0 %v191_v0  ;;  %v188_v7 = vld [vmem:[%s249_s1 + $0x8] sm:$0xff]   ;;  %v189_v8 = vld [vmem:[%s249_s1] sm:$0xff]  }
   0x4   :  { %v190_v9 = vld [vmem:[%s250_s0] sm:$0xff]  }
   0x5   :  { %v141_v10 = vld [vmem:[%s251_s2] ss:$0 sm:$0xff] }
   0x6   :  { %163 = vmatpush3.bf16.msra.mxu0 %v183_v2 }
   0x7   :  { %164 = vmatprep.subr.bf16.mxu0 %v191_v0 }
   0xa   :  { %165 = vmatpush3.bf16.msra.mxu0 %v184_v3 }
   0xb   :  { %166 = vmatprep.subr.bf16.mxu0 %v191_v0 }
   0xe   :  { %167 = vmatpush3.bf16.msra.mxu0 %v185_v4 }
   0xf   :  { %168 = vmatprep.subr.bf16.mxu0 %v191_v0 }
  0x12   :  { %169 = vmatpush3.bf16.msra.mxu0 %v186_v5 }
  0x13   :  { %170 = vmatprep.subr.bf16.mxu0 %v191_v0 }
  0x16   :  { %171 = vmatpush3.bf16.msra.mxu0 %v187_v6 }
  0x17   :  { %172 = vmatprep.subr.bf16.mxu0 %v191_v0 }
  0x1a   :  { %173 = vmatpush3.bf16.msra.mxu0 %v188_v7 }
  0x1b   :  { %174 = vmatprep.subr.bf16.mxu0 %v191_v0 }
  0x1e   :  { %175 = vmatpush3.bf16.msra.mxu0 %v189_v8 }
  0x21   :  { %177 = vmatmul.mubr.bf16.vlgmr.msra.gmra.mxu0 %v190_v9 }
  0xe1   :  { %v128_v11 = vpop.f32.mrf.mxu0 }
  0xe2   :  { %v129_v12 = vadd.f32 %v141_v10, %v128_v11 }
  0xe3   :  { %v178_v13 = vpop.f32.mrf.mxu0 }
  0xe4   :  { %135 = vst [vmem:[%s252_s3] sm:$0xff] %v129_v12 }
  0xe5   :  { %v131_v14 = vpop.f32.mrf.mxu0 }
  0xe6   :  { %v132_v15 = vadd.f32 %v141_v10, %v131_v14 }
  0xe7   :  { %v179_v16 = vpop.f32.mrf.mxu0 }
  0xe8   :  { %136 = vst [vmem:[%s252_s3 + $0x8] sm:$0xff] %v132_v15 }

// kernel: lstm_forward_prepared.2
= control target key start
LH: loop header
LB: loop body
LE: loop exit
PB: predicated region body
PF: predicated region fallthrough
CT: control target
= control target key end

     0   :  { %s4131_s0 = inlined_call_operand.vmem [shape: bf16[1,128,128], index: 0, kind: input, shape index: {}]   ;;  %s4132_s1 = inlined_call_operand.vmem [shape: bf16[128,512], index: 1, kind: input, shape index: {}]   ;;  %s4133_s2 = inlined_call_operand.vmem [shape: bf16[128,512], index: 2, kind: input, shape index: {}]   ;;  %s4134_s3 = inlined_call_operand.vmem [shape: f32[1,512], index: 3, kind: input, shape index: {}]   ;;  %s4135_s4 = inlined_call_operand.vmem [shape: bf16[16,128], index: 4, kind: output, shape index: {}]  }
   0x1   :  { %v3054_v0 = vld [vmem:[%s4132_s1] sm:$0xff]  ;;  %v3059_v1 = vld [vmem:[%s4132_s1 + $0x8] sm:$0xff]  ;;  %v3064_v2 = vld [vmem:[%s4132_s1 + $0x10] sm:$0xff] }
   0x2   :  { %v3069_v3 = vld [vmem:[%s4132_s1 + $0x18] sm:$0xff]  ;;  %v3074_v4 = vld [vmem:[%s4132_s1 + $0x20] sm:$0xff]  ;;  %v3079_v5 = vld [vmem:[%s4132_s1 + $0x28] sm:$0xff] }
   0x3   :  { %v3084_v6 = vld [vmem:[%s4132_s1 + $0x30] sm:$0xff]  ;;  %v3089_v7 = vld [vmem:[%s4132_s1 + $0x38] sm:$0xff]  ;;  %v3094_v8 = vld [vmem:[%s4132_s1 + $0x40] sm:$0xff] }
   0x4   :  { %v3099_v9 = vld [vmem:[%s4132_s1 + $0x48] sm:$0xff]  ;;  %v3104_v10 = vld [vmem:[%s4132_s1 + $0x50] sm:$0xff]  ;;  %v3109_v11 = vld [vmem:[%s4132_s1 + $0x58] sm:$0xff] }
   0x5   :  { %v3114_v12 = vld [vmem:[%s4132_s1 + $0x60] sm:$0xff]  ;;  %v3119_v13 = vld [vmem:[%s4132_s1 + $0x68] sm:$0xff]  ;;  %v3124_v14 = vld [vmem:[%s4132_s1 + $0x70] sm:$0xff] }
   0x6   :  { %v3129_v15 = vld [vmem:[%s4132_s1 + $0x78] sm:$0xff]  ;;  %v3134_v16 = vld [vmem:[%s4132_s1 + $0x80] sm:$0xff]  ;;  %v3139_v17 = vld [vmem:[%s4132_s1 + $0x88] sm:$0xff] }
   0x7   :  { %v3144_v18 = vld [vmem:[%s4132_s1 + $0x90] sm:$0xff]  ;;  %v3149_v19 = vld [vmem:[%s4132_s1 + $0x98] sm:$0xff]  ;;  %v3154_v20 = vld [vmem:[%s4132_s1 + $0xa0] sm:$0xff] }
   0x8   :  { %v3159_v21 = vld [vmem:[%s4132_s1 + $0xa8] sm:$0xff]  ;;  %v3164_v22 = vld [vmem:[%s4132_s1 + $0xb0] sm:$0xff]  ;;  %v3169_v23 = vld [vmem:[%s4132_s1 + $0xb8] sm:$0xff] }
   0x9   :  { %v3174_v24 = vld [vmem:[%s4132_s1 + $0xc0] sm:$0xff]  ;;  %v3179_v25 = vld [vmem:[%s4132_s1 + $0xc8] sm:$0xff]  ;;  %v3184_v26 = vld [vmem:[%s4132_s1 + $0xd0] sm:$0xff] }
   0xa   :  { %v3189_v27 = vld [vmem:[%s4132_s1 + $0xd8] sm:$0xff]  ;;  %v105_v28 = vld [vmem:[%s4132_s1 + $0xe0] sm:$0xff]  ;;  %v107_v29 = vld [vmem:[%s4132_s1 + $0xe8] sm:$0xff] }
   0xb   :  { %v109_v30 = vld [vmem:[%s4132_s1 + $0xf0] sm:$0xff]  ;;  %v111_v31 = vld [vmem:[%s4132_s1 + $0xf8] sm:$0xff] }
   0xc   :  { %120 = vsyncadd [#allocation8], 4096  ;;  %v3206_v32 = vld [vmem:[%s4133_s2] sm:$0xff]  ;;  %v3211_v33 = vld [vmem:[%s4133_s2 + $0x8] sm:$0xff] }
   0xd   :  { %4169 = vst [vmem:[#allocation15_spill] sm:$0xff] %v3206_v32  ;;  %4170 = vst [vmem:[#allocation16_spill] sm:$0xff] %v3211_v33  ;;  %v3216_v34 = vld [vmem:[%s4133_s2 + $0x10] sm:$0xff]  ;;  %v3221_v35 = vld [vmem:[%s4133_s2 + $0x18] sm:$0xff] }
   0xe   :  { %4171 = vst [vmem:[#allocation17_spill] sm:$0xff] %v3216_v34  ;;  %4172 = vst [vmem:[#allocation18_spill] sm:$0xff] %v3221_v35  ;;  %v3226_v36 = vld [vmem:[%s4133_s2 + $0x20] sm:$0xff]  ;;  %v3231_v37 = vld [vmem:[%s4133_s2 + $0x28] sm:$0xff] }
   0xf   :  { %4173 = vst [vmem:[#allocation19_spill] sm:$0xff] %v3226_v36  ;;  %4174 = vst [vmem:[#allocation20_spill] sm:$0xff] %v3231_v37  ;;  %v3236_v38 = vld [vmem:[%s4133_s2 + $0x30] sm:$0xff]  ;;  %v3241_v39 = vld [vmem:[%s4133_s2 + $0x38] sm:$0xff] }
  0x10   :  { %4175 = vst [vmem:[#allocation21_spill] sm:$0xff] %v3236_v38  ;;  %4176 = vst [vmem:[#allocation22_spill] sm:$0xff] %v3241_v39  ;;  %v3246_v40 = vld [vmem:[%s4133_s2 + $0x40] sm:$0xff]  ;;  %v3251_v41 = vld [vmem:[%s4133_s2 + $0x48] sm:$0xff] }
  0x11   :  { %v3256_v42 = vld [vmem:[%s4133_s2 + $0x50] sm:$0xff]  ;;  %v3261_v43 = vld [vmem:[%s4133_s2 + $0x58] sm:$0xff]  ;;  %v3266_v44 = vld [vmem:[%s4133_s2 + $0x60] sm:$0xff] }
  0x12   :  { %v3271_v45 = vld [vmem:[%s4133_s2 + $0x68] sm:$0xff]  ;;  %v3276_v46 = vld [vmem:[%s4133_s2 + $0x70] sm:$0xff]  ;;  %v3281_v47 = vld [vmem:[%s4133_s2 + $0x78] sm:$0xff] }
  0x13   :  { %v3286_v48 = vld [vmem:[%s4133_s2 + $0x80] sm:$0xff]  ;;  %v3291_v49 = vld [vmem:[%s4133_s2 + $0x88] sm:$0xff]  ;;  %v3296_v50 = vld [vmem:[%s4133_s2 + $0x90] sm:$0xff] }
  0x14   :  { %v3301_v51 = vld [vmem:[%s4133_s2 + $0x98] sm:$0xff]  ;;  %v3306_v52 = vld [vmem:[%s4133_s2 + $0xa0] sm:$0xff]  ;;  %v3311_v53 = vld [vmem:[%s4133_s2 + $0xa8] sm:$0xff] }
  0x15   :  { %v3316_v54 = vld [vmem:[%s4133_s2 + $0xb0] sm:$0xff]  ;;  %v3321_v55 = vld [vmem:[%s4133_s2 + $0xb8] sm:$0xff]  ;;  %v3326_v56 = vld [vmem:[%s4133_s2 + $0xc0] sm:$0xff] }
  0x16   :  { %v3331_v57 = vld [vmem:[%s4133_s2 + $0xc8] sm:$0xff]  ;;  %v3336_v58 = vld [vmem:[%s4133_s2 + $0xd0] sm:$0xff]  ;;  %v3341_v59 = vld [vmem:[%s4133_s2 + $0xd8] sm:$0xff] }
  0x17   :  { %v3346_v60 = vld [vmem:[%s4133_s2 + $0xe0] sm:$0xff]  ;;  %v3351_v61 = vld [vmem:[%s4133_s2 + $0xe8] sm:$0xff]  ;;  %v3356_v62 = vld [vmem:[%s4133_s2 + $0xf0] sm:$0xff] }
  0x18   :  { %v3361_v63 = vld [vmem:[%s4133_s2 + $0xf8] sm:$0xff] }
  0x19   :  { %226 = vsyncadd [#allocation8 + $0x1], 4096  ;;  %v246_v33 = vld [vmem:[%s4134_s3] sm:$0xf] }
  0x1a   :  { %247 = vst [vmem:[#allocation4] sm:$0xf] %v246_v33 }
  0x1b   :  { %273 = vsyncadd [#allocation8 + $0x2], 64 }
  0x1c   :  { %3019 = dma.done.wait [#allocation8], 4096 }
  0x1d   :  { %3020 = vsyncadd [#allocation8], 4294963200 }
  0x1e   :  { %3021 = dma.done.wait [#allocation8 + $0x1], 4096 }
  0x1f   :  { %3022 = vsyncadd [#allocation8 + $0x1], 4294963200  ;;  %v2588_v35 = vcombine.high %v105_v28, %v109_v30  ;;  %v2590_v32 = vcombine.high %v107_v29, %v111_v31  ;;  %v2587_v34 = vcombine.low %v105_v28, %v109_v30  ;;  %v2589_v37 = vcombine.low %v107_v29, %v111_v31 }
  0x20   :  { %3023 = dma.done.wait [#allocation8 + $0x2], 64 }
  0x21   :  { %3024 = vsyncadd [#allocation8 + $0x2], 4294967232  ;;  %v2584_v39 = vcombine.high %v3174_v24, %v3184_v26  ;;  %v2586_v36 = vcombine.high %v3179_v25, %v3189_v27  ;;  %565 = vmatprep.subr.bf16.mxu0 %v2588_v35  ;;  %678 = vmatprep.subr.bf16.mxu1 %v2590_v32  ;;  %v2583_v33 = vcombine.low %v3174_v24, %v3184_v26  ;;  %v4144_v28 = vmov 0  }
  0x22   :  { %566 = vmatpush1.bf16.msra.mxu0 %v2587_v34  ;;  %679 = vmatpush1.bf16.msra.mxu1 %v2589_v37  ;;  %v2585_v38 = vcombine.low %v3179_v25, %v3189_v27  ;;  %283 = vst [vmem:[#allocation5] sm:$0xf] %v4144_v28  ;;  %284 = vst [vmem:[#allocation5 + $0x4] sm:$0xf] %v4144_v28  ;;  %v2580_v29 = vcombine.high %v3154_v20, %v3164_v22 }
  0x23   :  { %567 = vmatprep.subr.bf16.mxu0 %v2584_v39  ;;  %680 = vmatprep.subr.bf16.mxu1 %v2586_v36  ;;  %v2582_v30 = vcombine.high %v3159_v21, %v3169_v23  ;;  %v2579_v24 = vcombine.low %v3154_v20, %v3164_v22  ;;  %v2581_v25 = vcombine.low %v3159_v21, %v3169_v23  ;;  %v2755_v36 = vld [vmem:[%s4131_s0 + $0x8] sm:$0xff]  }
  0x24   :  { %597 = vmatprep.mubr.bf16.mxu0 %v4144_v28  ;;  %710 = vmatprep.mubr.bf16.mxu1 %v4144_v28  ;;  %v2576_v26 = vcombine.high %v3134_v16, %v3144_v18  ;;  %v2578_v27 = vcombine.high %v3139_v17, %v3149_v19  ;;  %v2575_v31 = vcombine.low %v3134_v16, %v3144_v18 }
  0x25   :  { %v2577_v32 = vcombine.low %v3139_v17, %v3149_v19  ;;  %v2572_v20 = vcombine.high %v3114_v12, %v3124_v14  ;;  %v2574_v21 = vcombine.high %v3119_v13, %v3129_v15  ;;  %v2571_v22 = vcombine.low %v3114_v12, %v3124_v14 }
  0x26   :  { %568 = vmatpush1.bf16.msra.mxu0 %v2583_v33  ;;  %681 = vmatpush1.bf16.msra.mxu1 %v2585_v38  ;;  %v2573_v23 = vcombine.low %v3119_v13, %v3129_v15  ;;  %v2568_v16 = vcombine.high %v3094_v8, %v3104_v10  ;;  %v2570_v17 = vcombine.high %v3099_v9, %v3109_v11 }
  0x27   :  { %569 = vmatprep.subr.bf16.mxu0 %v2580_v29  ;;  %682 = vmatprep.subr.bf16.mxu1 %v2582_v30  ;;  %v2567_v18 = vcombine.low %v3094_v8, %v3104_v10  ;;  %v2569_v19 = vcombine.low %v3099_v9, %v3109_v11  ;;  %v2564_v12 = vcombine.high %v3074_v4, %v3084_v6  ;;  %v4183_v29 = vld [vmem:[#allocation18_spill] sm:$0xff]  ;;  %v4184_v30 = vld [vmem:[#allocation16_spill] sm:$0xff] }
  0x28   :  { %v2566_v13 = vcombine.high %v3079_v5, %v3089_v7  ;;  %v2563_v14 = vcombine.low %v3074_v4, %v3084_v6  ;;  %v2565_v15 = vcombine.low %v3079_v5, %v3089_v7  ;;  %v2560_v8 = vcombine.high %v3054_v0, %v3064_v2  ;;  %v2754_v6 = vld [vmem:[%s4131_s0] sm:$0xff]  }
  0x29   :  { %v2562_v9 = vcombine.high %v3059_v1, %v3069_v3  ;;  %v2559_v10 = vcombine.low %v3054_v0, %v3064_v2  ;;  %v2561_v11 = vcombine.low %v3059_v1, %v3069_v3  ;;  %v3428_v4 = vcombine.high %v3346_v60, %v3356_v62 }
  0x2a   :  { %570 = vmatpush1.bf16.msra.mxu0 %v2579_v24  ;;  %683 = vmatpush1.bf16.msra.mxu1 %v2581_v25  ;;  %v3432_v5 = vcombine.high %v3351_v61, %v3361_v63  ;;  %v3439_v0 = vcombine.low %v3346_v60, %v3356_v62  ;;  %v3444_v1 = vcombine.high %v3326_v56, %v3336_v58  ;;  %v2757_v60 = vld [vmem:[%s4131_s0 + $0x18] sm:$0xff]  }
  0x2b   :  { %571 = vmatprep.subr.bf16.mxu0 %v2576_v26  ;;  %684 = vmatprep.subr.bf16.mxu1 %v2578_v27  ;;  %v3449_v2 = vcombine.low %v3351_v61, %v3361_v63  ;;  %v3453_v3 = vcombine.high %v3331_v57, %v3341_v59  ;;  %v3459_v7 = vcombine.low %v3326_v56, %v3336_v58  ;;  %v4180_v61 = vld [vmem:[#allocation20_spill] sm:$0xff]  ;;  %v2758_v27 = vld [vmem:[%s4131_s0 + $0x20] sm:$0xff]  }
  0x2c   :  { %v3465_v34 = vcombine.high %v3306_v52, %v3316_v54  ;;  %v3470_v35 = vcombine.low %v3331_v57, %v3341_v59  ;;  %v3480_v37 = vcombine.low %v3306_v52, %v3316_v54  ;;  %v3484_v38 = vcombine.high %v3311_v53, %v3321_v55  ;;  %v2756_v57 = vld [vmem:[%s4131_s0 + $0x10] sm:$0xff]  }
  0x2d   :  { %v3488_v39 = vcombine.high %v3286_v48, %v3296_v50  ;;  %v3493_v56 = vcombine.low %v3311_v53, %v3321_v55  ;;  %v3497_v52 = vcombine.high %v3291_v49, %v3301_v51  ;;  %v3504_v54 = vcombine.low %v3286_v48, %v3296_v50 }
  0x2e   :  { %572 = vmatpush1.bf16.msra.mxu0 %v2575_v31  ;;  %685 = vmatpush1.bf16.msra.mxu1 %v2577_v32  ;;  %v3510_v53 = vcombine.high %v3266_v44, %v3276_v46  ;;  %v3515_v55 = vcombine.low %v3291_v49, %v3301_v51  ;;  %v3524_v48 = vcombine.low %v3266_v44, %v3276_v46  ;;  %v2759_v31 = vld [vmem:[%s4131_s0 + $0x28] sm:$0xff]   ;;  %v2760_v32 = vld [vmem:[%s4131_s0 + $0x30] sm:$0xff]  }
  0x2f   :  { %573 = vmatprep.subr.bf16.mxu0 %v2572_v20  ;;  %686 = vmatprep.subr.bf16.mxu1 %v2574_v21  ;;  %v3528_v50 = vcombine.high %v3271_v45, %v3281_v47  ;;  %v3533_v49 = vcombine.high %v3246_v40, %v3256_v42  ;;  %v3538_v51 = vcombine.low %v3271_v45, %v3281_v47  ;;  %v4177_v45 = vld [vmem:[#allocation21_spill] sm:$0xff]  ;;  %v4178_v47 = vld [vmem:[#allocation19_spill] sm:$0xff]  ;;  %v2762_v21 = vld [vmem:[#allocation5] sm:$0xff]  }
  0x30   :  { %v3542_v44 = vcombine.high %v3251_v41, %v3261_v43  ;;  %v3549_v46 = vcombine.low %v3246_v40, %v3256_v42  ;;  %v3555_v58 = vcombine.high %v4178_v47, %v4177_v45  ;;  %v3560_v59 = vcombine.low %v3251_v41, %v3261_v43  ;;  %v4179_v42 = vld [vmem:[#allocation22_spill] sm:$0xff]  ;;  %v4181_v41 = vld [vmem:[#allocation17_spill] sm:$0xff]  ;;  %v4182_v43 = vld [vmem:[#allocation15_spill] sm:$0xff] }
  0x31   :  { %v3569_v40 = vcombine.low %v4178_v47, %v4177_v45  ;;  %v3573_v62 = vcombine.high %v4180_v61, %v4179_v42  ;;  %v3579_v63 = vcombine.high %v4182_v43, %v4181_v41  ;;  %v3583_v33 = vcombine.low %v4180_v61, %v4179_v42  ;;  %v2761_v20 = vld [vmem:[%s4131_s0 + $0x38] sm:$0xff]  }
  0x32   :  { %574 = vmatpush1.bf16.msra.mxu0 %v2571_v22  ;;  %687 = vmatpush1.bf16.msra.mxu1 %v2573_v23  ;;  %v3587_v24 = vcombine.high %v4184_v30, %v4183_v29  ;;  %v3595_v25 = vcombine.low %v4182_v43, %v4181_v41  ;;  %v3601_v26 = vcombine.low %v4184_v30, %v4183_v29  ;;  %v337_v22 = vlaneseq }
  0x33   :  { %575 = vmatprep.subr.bf16.mxu0 %v2568_v16  ;;  %688 = vmatprep.subr.bf16.mxu1 %v2570_v17 }
  0x34   :  { %v338_v23 = vshrl.u32 %v337_v22, 7 }
  0x36   :  { %576 = vmatpush1.bf16.msra.mxu0 %v2567_v18  ;;  %689 = vmatpush1.bf16.msra.mxu1 %v2569_v19 }
  0x37   :  { %577 = vmatprep.subr.bf16.mxu0 %v2564_v12  ;;  %690 = vmatprep.subr.bf16.mxu1 %v2566_v13  ;;  %v339_v12 = vsub.s32 0, %v338_v23  ;;  %v347_v13 = vsub.s32 2, %v338_v23 }
  0x3a   :  { %578 = vmatpush1.bf16.msra.mxu0 %v2563_v14  ;;  %691 = vmatpush1.bf16.msra.mxu1 %v2565_v15  ;;  %v335_v14 = vld [vmem:[#allocation4] sm:$0xf] }
  0x3b   :  { %579 = vmatprep.subr.bf16.mxu0 %v2560_v8  ;;  %692 = vmatprep.subr.bf16.mxu1 %v2562_v9  ;;  %v343_v9 = vsub.s32 1, %v338_v23 }
  0x3e   :  { %580 = vmatpush1.bf16.msra.mxu0 %v2559_v10  ;;  %693 = vmatpush1.bf16.msra.mxu1 %v2561_v11  ;;  %v351_v10 = vsub.s32 3, %v338_v23 }
  0x3f   :  { %1232 = vmatprep.subr.bf16.mxu0 %v3428_v4  ;;  %1275 = vmatprep.subr.bf16.mxu1 %v3432_v5 }
  0x40   :  { %v3684_v42 = vrot.slane %v335_v14, %v351_v10 }
  0x41   :  { %598 = vmatmul.mubr.bf16.vlgmr.msra.gmra.mxu0 %v2754_v6  ;;  %711 = vmatmul.mubr.bf16.vlgmr.msra.gmra.mxu1 %v2754_v6 }
  0x42   :  { %1233 = vmatpush1.bf16.msra.mxu0 %v3439_v0  ;;  %607 = vmatprep.mubr.bf16.mxu0 %v4144_v28 }
  0x43   :  { %720 = vmatprep.mubr.bf16.mxu1 %v4144_v28  ;;  %1234 = vmatprep.subr.bf16.mxu0 %v3444_v1 }
  0x44   :  { %1276 = vmatpush1.bf16.msra.mxu1 %v3449_v2 }
  0x45   :  { %1277 = vmatprep.subr.bf16.mxu1 %v3453_v3 }
  0x46   :  { %1235 = vmatpush1.bf16.msra.mxu0 %v3459_v7 }
  0x47   :  { %1236 = vmatprep.subr.bf16.mxu0 %v3465_v34 }
  0x48   :  { %1278 = vmatpush1.bf16.msra.mxu1 %v3470_v35 }
  0x49   :  { %608 = vmatmul.mubr.bf16.gmra.mxu0 %v2755_v36  ;;  %721 = vmatmul.mubr.bf16.gmra.mxu1 %v2755_v36  ;;  %v3678_v36 = vrot.slane %v335_v14, %v339_v12 }
  0x4a   :  { %617 = vmatprep.mubr.bf16.mxu0 %v4144_v28  ;;  %730 = vmatprep.mubr.bf16.mxu1 %v4144_v28 }
  0x4b   :  { %1237 = vmatpush1.bf16.msra.mxu0 %v3480_v37  ;;  %1279 = vmatprep.subr.bf16.mxu1 %v3484_v38 }
  0x4c   :  { %1238 = vmatprep.subr.bf16.mxu0 %v3488_v39  ;;  %1280 = vmatpush1.bf16.msra.mxu1 %v3493_v56 }
  0x4d   :  { %1281 = vmatprep.subr.bf16.mxu1 %v3497_v52 }
  0x4f   :  { %1239 = vmatpush1.bf16.msra.mxu0 %v3504_v54 }
  0x50   :  { %1240 = vmatprep.subr.bf16.mxu0 %v3510_v53  ;;  %1282 = vmatpush1.bf16.msra.mxu1 %v3515_v55 }
  0x51   :  { %618 = vmatmul.mubr.bf16.gmra.mxu0 %v2756_v57  ;;  %731 = vmatmul.mubr.bf16.gmra.mxu1 %v2756_v57  ;;  %v3680_v57 = vrot.slane %v335_v14, %v347_v13 }
  0x52   :  { %627 = vmatprep.mubr.bf16.mxu0 %v4144_v28  ;;  %740 = vmatprep.mubr.bf16.mxu1 %v4144_v28 }
  0x53   :  { %1241 = vmatpush1.bf16.msra.mxu0 %v3524_v48  ;;  %1283 = vmatprep.subr.bf16.mxu1 %v3528_v50 }
  0x54   :  { %1242 = vmatprep.subr.bf16.mxu0 %v3533_v49  ;;  %1284 = vmatpush1.bf16.msra.mxu1 %v3538_v51 }
  0x55   :  { %1285 = vmatprep.subr.bf16.mxu1 %v3542_v44 }
  0x57   :  { %1243 = vmatpush1.bf16.msra.mxu0 %v3549_v46 }
  0x58   :  { %1244 = vmatprep.subr.bf16.mxu0 %v3555_v58  ;;  %1286 = vmatpush1.bf16.msra.mxu1 %v3560_v59 }
  0x59   :  { %628 = vmatmul.mubr.bf16.gmra.mxu0 %v2757_v60  ;;  %741 = vmatmul.mubr.bf16.gmra.mxu1 %v2757_v60  ;;  %v3682_v60 = vrot.slane %v335_v14, %v343_v9 }
  0x5a   :  { %637 = vmatprep.mubr.bf16.mxu0 %v4144_v28  ;;  %750 = vmatprep.mubr.bf16.mxu1 %v4144_v28 }
  0x5b   :  { %1245 = vmatpush1.bf16.msra.mxu0 %v3569_v40  ;;  %1287 = vmatprep.subr.bf16.mxu1 %v3573_v62 }
  0x5c   :  { %1246 = vmatprep.subr.bf16.mxu0 %v3579_v63  ;;  %1288 = vmatpush1.bf16.msra.mxu1 %v3583_v33 }
  0x5d   :  { %1289 = vmatprep.subr.bf16.mxu1 %v3587_v24 }
  0x5f   :  { %1247 = vmatpush1.bf16.msra.mxu0 %v3595_v25 }
  0x60   :  { %1290 = vmatpush1.bf16.msra.mxu1 %v3601_v26  ;;  %1390 = vmatprep.subr.bf16.mxu0 %v3428_v4 }
  0x61   :  { %638 = vmatmul.mubr.bf16.gmra.mxu0 %v2758_v27  ;;  %751 = vmatmul.mubr.bf16.gmra.mxu1 %v2758_v27 }
  0x62   :  { %647 = vmatprep.mubr.bf16.mxu0 %v4144_v28  ;;  %760 = vmatprep.mubr.bf16.mxu1 %v4144_v28 }
  0x63   :  { %1433 = vmatprep.subr.bf16.mxu1 %v3432_v5 }
  0x69   :  { %648 = vmatmul.mubr.bf16.gmra.mxu0 %v2759_v31  ;;  %761 = vmatmul.mubr.bf16.gmra.mxu1 %v2759_v31 }
  0x6a   :  { %657 = vmatprep.mubr.bf16.mxu0 %v4144_v28  ;;  %770 = vmatprep.mubr.bf16.mxu1 %v4144_v28 }
  0x71   :  { %658 = vmatmul.mubr.bf16.gmra.mxu0 %v2760_v32  ;;  %771 = vmatmul.mubr.bf16.gmra.mxu1 %v2760_v32 }
  0x72   :  { %667 = vmatprep.mubr.bf16.mxu0 %v4144_v28  ;;  %780 = vmatprep.mubr.bf16.mxu1 %v4144_v28 }
  0x79   :  { %668 = vmatmul.mubr.bf16.gmra.mxu0 %v2761_v20  ;;  %781 = vmatmul.mubr.bf16.gmra.mxu1 %v2761_v20 }
  0x7a   :  { %1264 = vmatprep.mubr.bf16.mxu0 %v4144_v28  ;;  %1307 = vmatprep.mubr.bf16.mxu1 %v4144_v28 }
  0x81   :  { %1265 = vmatmul.mubr.bf16.vlgmr.msra.gmra.mxu0 %v2762_v21  ;;  %1308 = vmatmul.mubr.bf16.vlgmr.msra.gmra.mxu1 %v2762_v21 }
  0x82   :  { %1391 = vmatpush1.bf16.msra.mxu0 %v3439_v0  ;;  %1434 = vmatpush1.bf16.msra.mxu1 %v3449_v2 }
  0x83   :  { %1392 = vmatprep.subr.bf16.mxu0 %v3444_v1  ;;  %1435 = vmatprep.subr.bf16.mxu1 %v3453_v3 }
  0x84   :  { %1422 = vmatprep.mubr.bf16.mxu0 %v4144_v28  ;;  %1465 = vmatprep.mubr.bf16.mxu1 %v4144_v28 }
  0x86   :  { %1393 = vmatpush1.bf16.msra.mxu0 %v3459_v7  ;;  %1436 = vmatpush1.bf16.msra.mxu1 %v3470_v35 }
  0x87   :  { %1394 = vmatprep.subr.bf16.mxu0 %v3465_v34  ;;  %1437 = vmatprep.subr.bf16.mxu1 %v3484_v38 }
  0x8a   :  { %1395 = vmatpush1.bf16.msra.mxu0 %v3480_v37  ;;  %1438 = vmatpush1.bf16.msra.mxu1 %v3493_v56 }
  0x8b   :  { %1396 = vmatprep.subr.bf16.mxu0 %v3488_v39  ;;  %1439 = vmatprep.subr.bf16.mxu1 %v3497_v52 }
  0x8e   :  { %1397 = vmatpush1.bf16.msra.mxu0 %v3504_v54  ;;  %1440 = vmatpush1.bf16.msra.mxu1 %v3515_v55 }
  0x8f   :  { %1398 = vmatprep.subr.bf16.mxu0 %v3510_v53  ;;  %1441 = vmatprep.subr.bf16.mxu1 %v3528_v50 }
  0x92   :  { %1399 = vmatpush1.bf16.msra.mxu0 %v3524_v48  ;;  %1442 = vmatpush1.bf16.msra.mxu1 %v3538_v51 }
  0x93   :  { %1400 = vmatprep.subr.bf16.mxu0 %v3533_v49  ;;  %1443 = vmatprep.subr.bf16.mxu1 %v3542_v44 }
  0x96   :  { %1401 = vmatpush1.bf16.msra.mxu0 %v3549_v46  ;;  %1444 = vmatpush1.bf16.msra.mxu1 %v3560_v59 }
  0x97   :  { %1402 = vmatprep.subr.bf16.mxu0 %v3555_v58  ;;  %1445 = vmatprep.subr.bf16.mxu1 %v3573_v62 }
  0x9a   :  { %1403 = vmatpush1.bf16.msra.mxu0 %v3569_v40  ;;  %1446 = vmatpush1.bf16.msra.mxu1 %v3583_v33 }
  0x9b   :  { %1404 = vmatprep.subr.bf16.mxu0 %v3579_v63  ;;  %1447 = vmatprep.subr.bf16.mxu1 %v3587_v24 }
  0x9e   :  { %1405 = vmatpush1.bf16.msra.mxu0 %v3595_v25  ;;  %1448 = vmatpush1.bf16.msra.mxu1 %v3601_v26 }
  0x9f   :  { %1548 = vmatprep.subr.bf16.mxu0 %v3428_v4  ;;  %1591 = vmatprep.subr.bf16.mxu1 %v3432_v5 }
 0x101   :  { %v3662_v16 = vpop.f32.mrf.mxu0  ;;  %v3664_v17 = vpop.f32.mrf.mxu1 }
 0x103   :  { %v3666_v18 = vpop.f32.mrf.mxu0  ;;  %v3668_v19 = vpop.f32.mrf.mxu1 }
 0x105   :  { %v3670_v15 = vpop.f32.mrf.mxu0  ;;  %v3672_v8 = vpop.f32.mrf.mxu1 }
 0x107   :  { %v3674_v11 = vpop.f32.mrf.mxu0  ;;  %v3676_v6 = vpop.f32.mrf.mxu1 }
 0x109   :  { %v609_v45 = vpop.f32.mrf.mxu0  ;;  %v722_v47 = vpop.f32.mrf.mxu1 }
 0x10a   :  { %v610_v61 = vadd.f32 %v609_v45, %v3678_v36  ;;  %v723_v41 = vadd.f32 %v722_v47, %v3680_v57 }
 0x10b   :  { %v611_v43 = vpop.f32.mrf.mxu0  ;;  %v724_v29 = vpop.f32.mrf.mxu1 }
 0x10c   :  { %v612_v30 = vadd.f32 %v611_v43, %v3682_v60  ;;  %v725_v27 = vadd.f32 %v724_v29, %v3684_v42 }
 0x10d   :  { %v613_v31 = vpop.f32.mrf.mxu0  ;;  %v726_v32 = vpop.f32.mrf.mxu1 }
 0x10e   :  { %v3690_v20 = vpack.c.bf16 %v612_v30, %v610_v61  ;;  %v3692_v21 = vpack.c.bf16 %v725_v27, %v723_v41  ;;  %v614_v22 = vadd.f32 %v613_v31, %v3678_v36  ;;  %v727_v23 = vadd.f32 %v726_v32, %v3680_v57 }
 0x10f   :  { %v615_v12 = vpop.f32.mrf.mxu0  ;;  %v728_v13 = vpop.f32.mrf.mxu1 }
 0x110   :  { %4185 = vst [vmem:[#allocation21_spill] sm:$0xff] %v3692_v21  ;;  %v616_v14 = vadd.f32 %v615_v12, %v3682_v60  ;;  %v729_v9 = vadd.f32 %v728_v13, %v3684_v42 }
 0x111   :  { %v619_v10 = vpop.f32.mrf.mxu0  ;;  %v732_v45 = vpop.f32.mrf.mxu1 }
 0x112   :  { %v3698_v47 = vpack.c.bf16 %v616_v14, %v614_v22  ;;  %v3700_v43 = vpack.c.bf16 %v729_v9, %v727_v23  ;;  %v620_v61 = vadd.f32 %v619_v10, %v3678_v36  ;;  %v733_v41 = vadd.f32 %v732_v45, %v3680_v57 }
 0x113   :  { %v621_v29 = vpop.f32.mrf.mxu0  ;;  %v734_v30 = vpop.f32.mrf.mxu1 }
 0x114   :  { %4186 = vst [vmem:[#allocation19_spill] sm:$0xff] %v3700_v43  ;;  %v622_v27 = vadd.f32 %v621_v29, %v3682_v60  ;;  %v735_v31 = vadd.f32 %v734_v30, %v3684_v42 }
 0x115   :  { %v623_v32 = vpop.f32.mrf.mxu0  ;;  %v736_v12 = vpop.f32.mrf.mxu1 }
 0x116   :  { %v3706_v28 = vpack.c.bf16 %v622_v27, %v620_v61  ;;  %v3708_v13 = vpack.c.bf16 %v735_v31, %v733_v41  ;;  %v624_v22 = vadd.f32 %v623_v32, %v3678_v36  ;;  %v737_v23 = vadd.f32 %v736_v12, %v3680_v57 }
 0x117   :  { %v625_v14 = vpop.f32.mrf.mxu0  ;;  %v738_v9 = vpop.f32.mrf.mxu1 }
 0x118   :  { %4187 = vst [vmem:[#allocation22_spill] sm:$0xff] %v3706_v28  ;;  %4188 = vst [vmem:[#allocation20_spill] sm:$0xff] %v3708_v13  ;;  %v626_v10 = vadd.f32 %v625_v14, %v3682_v60  ;;  %v739_v45 = vadd.f32 %v738_v9, %v3684_v42 }
 0x119   :  { %v629_v43 = vpop.f32.mrf.mxu0  ;;  %v742_v29 = vpop.f32.mrf.mxu1 }
 0x11a   :  { %v3714_v21 = vpack.c.bf16 %v626_v10, %v624_v22  ;;  %v3716_v30 = vpack.c.bf16 %v739_v45, %v737_v23  ;;  %v630_v61 = vadd.f32 %v629_v43, %v3678_v36  ;;  %v743_v41 = vadd.f32 %v742_v29, %v3680_v57 }
 0x11b   :  { %v631_v27 = vpop.f32.mrf.mxu0  ;;  %v744_v31 = vpop.f32.mrf.mxu1 }
 0x11c   :  { %4189 = vst [vmem:[#allocation17_spill] sm:$0xff] %v3714_v21  ;;  %4190 = vst [vmem:[#allocation15_spill] sm:$0xff] %v3716_v30  ;;  %v632_v32 = vadd.f32 %v631_v27, %v3682_v60  ;;  %v745_v12 = vadd.f32 %v744_v31, %v3684_v42 }
 0x11d   :  { %v633_v13 = vpop.f32.mrf.mxu0  ;;  %v746_v14 = vpop.f32.mrf.mxu1 }
 0x11e   :  { %v3722_v28 = vpack.c.bf16 %v632_v32, %v630_v61  ;;  %v3724_v9 = vpack.c.bf16 %v745_v12, %v743_v41  ;;  %v634_v22 = vadd.f32 %v633_v13, %v3678_v36  ;;  %v747_v23 = vadd.f32 %v746_v14, %v3680_v57 }
 0x11f   :  { %v635_v10 = vpop.f32.mrf.mxu0  ;;  %v748_v43 = vpop.f32.mrf.mxu1 }
 0x120   :  { %4191 = vst [vmem:[#allocation18_spill] sm:$0xff] %v3722_v28  ;;  %4192 = vst [vmem:[#allocation16_spill] sm:$0xff] %v3724_v9  ;;  %v636_v45 = vadd.f32 %v635_v10, %v3682_v60  ;;  %v749_v29 = vadd.f32 %v748_v43, %v3684_v42 }
 0x121   :  { %v639_v30 = vpop.f32.mrf.mxu0  ;;  %v752_v27 = vpop.f32.mrf.mxu1 }
 0x122   :  { %v3730_v21 = vpack.c.bf16 %v636_v45, %v634_v22  ;;  %v3732_v31 = vpack.c.bf16 %v749_v29, %v747_v23  ;;  %v640_v61 = vadd.f32 %v639_v30, %v3678_v36  ;;  %v753_v41 = vadd.f32 %v752_v27, %v3680_v57 }
 0x123   :  { %v641_v32 = vpop.f32.mrf.mxu0  ;;  %v754_v13 = vpop.f32.mrf.mxu1 }
 0x124   :  { %4193 = vst [vmem:[#allocation23_spill] sm:$0xff] %v3730_v21  ;;  %4194 = vst [vmem:[#allocation24_spill] sm:$0xff] %v3732_v31  ;;  %v642_v12 = vadd.f32 %v641_v32, %v3682_v60  ;;  %v755_v14 = vadd.f32 %v754_v13, %v3684_v42 }
 0x125   :  { %v643_v9 = vpop.f32.mrf.mxu0  ;;  %v756_v10 = vpop.f32.mrf.mxu1 }
 0x126   :  { %v3738_v28 = vpack.c.bf16 %v642_v12, %v640_v61  ;;  %v3740_v43 = vpack.c.bf16 %v755_v14, %v753_v41  ;;  %v644_v22 = vadd.f32 %v643_v9, %v3678_v36  ;;  %v757_v23 = vadd.f32 %v756_v10, %v3680_v57 }
 0x127   :  { %v645_v45 = vpop.f32.mrf.mxu0  ;;  %v758_v30 = vpop.f32.mrf.mxu1 }
 0x128   :  { %4195 = vst [vmem:[#allocation25_spill] sm:$0xff] %v3738_v28  ;;  %4196 = vst [vmem:[#allocation26_spill] sm:$0xff] %v3740_v43  ;;  %v646_v29 = vadd.f32 %v645_v45, %v3682_v60  ;;  %v759_v27 = vadd.f32 %v758_v30, %v3684_v42 }
 0x129   :  { %v649_v31 = vpop.f32.mrf.mxu0  ;;  %v762_v32 = vpop.f32.mrf.mxu1 }
 0x12a   :  { %v3746_v21 = vpack.c.bf16 %v646_v29, %v644_v22  ;;  %v3748_v13 = vpack.c.bf16 %v759_v27, %v757_v23  ;;  %v650_v61 = vadd.f32 %v649_v31, %v3678_v36  ;;  %v763_v41 = vadd.f32 %v762_v32, %v3680_v57 }
 0x12b   :  { %v651_v12 = vpop.f32.mrf.mxu0  ;;  %v764_v9 = vpop.f32.mrf.mxu1 }
 0x12c   :  { %4197 = vst [vmem:[#allocation27_spill] sm:$0xff] %v3746_v21  ;;  %4198 = vst [vmem:[#allocation28_spill] sm:$0xff] %v3748_v13  ;;  %v652_v14 = vadd.f32 %v651_v12, %v3682_v60  ;;  %v765_v10 = vadd.f32 %v764_v9, %v3684_v42 }
 0x12d   :  { %v653_v43 = vpop.f32.mrf.mxu0  ;;  %v766_v45 = vpop.f32.mrf.mxu1 }
 0x12e   :  { %v3754_v28 = vpack.c.bf16 %v652_v14, %v650_v61  ;;  %v3756_v30 = vpack.c.bf16 %v765_v10, %v763_v41  ;;  %v654_v22 = vadd.f32 %v653_v43, %v3678_v36  ;;  %v767_v23 = vadd.f32 %v766_v45, %v3680_v57 }
 0x12f   :  { %v655_v29 = vpop.f32.mrf.mxu0  ;;  %v768_v31 = vpop.f32.mrf.mxu1 }
 0x130   :  { %4199 = vst [vmem:[#allocation29_spill] sm:$0xff] %v3754_v28  ;;  %4200 = vst [vmem:[#allocation30_spill] sm:$0xff] %v3756_v30  ;;  %v656_v27 = vadd.f32 %v655_v29, %v3682_v60  ;;  %v769_v32 = vadd.f32 %v768_v31, %v3684_v42 }
 0x131   :  { %v659_v13 = vpop.f32.mrf.mxu0  ;;  %v772_v12 = vpop.f32.mrf.mxu1 }
 0x132   :  { %v3762_v21 = vpack.c.bf16 %v656_v27, %v654_v22  ;;  %v3764_v9 = vpack.c.bf16 %v769_v32, %v767_v23  ;;  %v660_v61 = vadd.f32 %v659_v13, %v3678_v36  ;;  %v773_v41 = vadd.f32 %v772_v12, %v3680_v57 }
 0x133   :  { %v661_v14 = vpop.f32.mrf.mxu0  ;;  %v774_v43 = vpop.f32.mrf.mxu1  ;;  %v602_v32 = vadd.f32 %v3666_v18, %v3682_v60 }
 0x134   :  { %4201 = vst [vmem:[#allocation31_spill] sm:$0xff] %v3762_v21  ;;  %4202 = vst [vmem:[#allocation32_spill] sm:$0xff] %v3764_v9  ;;  %v662_v10 = vadd.f32 %v661_v14, %v3682_v60  ;;  %v775_v45 = vadd.f32 %v774_v43, %v3684_v42  ;;  %v600_v43 = vadd.f32 %v3662_v16, %v3678_v36 }
 0x135   :  { %v663_v30 = vpop.f32.mrf.mxu0  ;;  %v776_v29 = vpop.f32.mrf.mxu1 }
 0x136   :  { %v3770_v28 = vpack.c.bf16 %v662_v10, %v660_v61  ;;  %v3772_v31 = vpack.c.bf16 %v775_v45, %v773_v41  ;;  %v664_v22 = vadd.f32 %v663_v30, %v3678_v36  ;;  %v777_v23 = vadd.f32 %v776_v29, %v3680_v57 }
 0x137   :  { %v665_v27 = vpop.f32.mrf.mxu0  ;;  %v778_v13 = vpop.f32.mrf.mxu1  ;;  %v2709_v18 = vpack.c.bf16 %v602_v32, %v600_v43 }
 0x138   :  { %4203 = vst [vmem:[#allocation33_spill] sm:$0xff] %v3770_v28  ;;  %4204 = vst [vmem:[#allocation34_spill] sm:$0xff] %v3772_v31  ;;  %v666_v12 = vadd.f32 %v665_v27, %v3682_v60  ;;  %v779_v14 = vadd.f32 %v778_v13, %v3684_v42  ;;  %v606_v27 = vadd.f32 %v3674_v11, %v3682_v60 }
 0x139   :  { %v669_v61 = vpop.f32.mrf.mxu0  ;;  %v782_v10 = vpop.f32.mrf.mxu1 }
 0x13a   :  { %v3782_v41 = vpack.c.bf16 %v666_v12, %v664_v22  ;;  %v3784_v45 = vpack.c.bf16 %v779_v14, %v777_v23  ;;  %v670_v30 = vadd.f32 %v669_v61, %v3678_v36  ;;  %v783_v29 = vadd.f32 %v782_v10, %v3680_v57 }
 0x13b   :  { %v671_v31 = vpop.f32.mrf.mxu0  ;;  %v784_v28 = vpop.f32.mrf.mxu1  ;;  %v604_v22 = vadd.f32 %v3670_v15, %v3678_v36 }
 0x13c   :  { %4205 = vst [vmem:[#allocation35_spill] sm:$0xff] %v3782_v41  ;;  %4206 = vst [vmem:[#allocation36_spill] sm:$0xff] %v3784_v45  ;;  %v672_v13 = vadd.f32 %v671_v31, %v3682_v60  ;;  %v785_v16 = vadd.f32 %v784_v28, %v3684_v42  ;;  %v1026_v41 = vunpack.c.l.bf16 %v2709_v18 }
 0x13d   :  { %v673_v12 = vpop.f32.mrf.mxu0  ;;  %v786_v23 = vpop.f32.mrf.mxu1  ;;  %v2711_v11 = vpack.c.bf16 %v606_v27, %v604_v22  ;;  %v713_v27 = vadd.f32 %v3664_v17, %v3680_v57 }
 0x13e   :  { %v3794_v14 = vpack.c.bf16 %v672_v13, %v670_v30  ;;  %v3796_v61 = vpack.c.bf16 %v785_v16, %v783_v29  ;;  %v674_v10 = vadd.f32 %v673_v12, %v3678_v36  ;;  %v787_v32 = vadd.f32 %v786_v23, %v3680_v57 }
 0x13f   :  { %v675_v43 = vpop.f32.mrf.mxu0  ;;  %v788_v45 = vpop.f32.mrf.mxu1  ;;  %v1027_v13 = vunpack.c.h.bf16 %v2709_v18  ;;  %v1030_v23 = vunpack.c.l.bf16 %v2711_v11 }
 0x140   :  { %v676_v31 = vadd.f32 %v675_v43, %v3682_v60  ;;  %v789_v28 = vadd.f32 %v788_v45, %v3684_v42  ;;  %v715_v60 = vadd.f32 %v3668_v19, %v3684_v42 }
 0x141   :  { %v1266_v9 = vpop.f32.mrf.mxu0  ;;  %v1309_v29 = vpop.f32.mrf.mxu1 }
 0x142   :  { %v3802_v15 = vpack.c.bf16 %v676_v31, %v674_v10  ;;  %v3804_v21 = vpack.c.bf16 %v789_v28, %v787_v32  ;;  %v1318_v30 = vadd.f32 %v1266_v9, %v1026_v41  ;;  %v1031_v32 = vunpack.c.h.bf16 %v2711_v11 }
 0x143   :  { %v1268_v16 = vpop.f32.mrf.mxu0  ;;  %v1311_v10 = vpop.f32.mrf.mxu1  ;;  %v717_v9 = vadd.f32 %v3672_v8, %v3680_v57  ;;  %v719_v41 = vadd.f32 %v3676_v6, %v3684_v42  ;;  %v2710_v17 = vpack.c.bf16 %v715_v60, %v713_v27 }
 0x144   :  { %4207 = vst [vmem:[#allocation37_spill] sm:$0xff] %v3804_v21  ;;  %v2656_v36 = vmul.f32 -1.442695, %v1318_v30  ;;  %v1319_v12 = vadd.f32 %v1268_v16, %v1027_v13 }
 0x145   :  { %v1270_v45 = vpop.f32.mrf.mxu0  ;;  %v1313_v30 = vpop.f32.mrf.mxu1  ;;  %v2712_v13 = vpack.c.bf16 %v719_v41, %v717_v9  ;;  %v1029_v16 = vunpack.c.h.bf16 %v2710_v17 }
 0x146   :  { %2763 = vpow2.f32 %v2656_v36  ;;  %v2658_v22 = vmul.f32 -1.442695, %v1319_v12  ;;  %v1322_v43 = vadd.f32 %v1270_v45, %v1030_v23  ;;  %v1028_v12 = vunpack.c.l.bf16 %v2710_v17 }
 0x147   :  { %v1272_v18 = vpop.f32.mrf.mxu0  ;;  %v1315_v36 = vpop.f32.mrf.mxu1  ;;  %v1321_v11 = vadd.f32 %v1311_v10, %v1029_v16  ;;  %v1033_v23 = vunpack.c.h.bf16 %v2712_v13 }
 0x148   :  { %2765 = vpow2.f32 %v2658_v22  ;;  %v2657_v31 = vmul.f32 -1.442695, %v1322_v43  ;;  %v1323_v28 = vadd.f32 %v1272_v18, %v1031_v32  ;;  %v1320_v45 = vadd.f32 %v1309_v29, %v1028_v12 }
 0x149   :  { %v1325_v8 = vadd.f32 %v1315_v36, %v1033_v23  ;;  %v2660_v21 = vmul.f32 -1.442695, %v1321_v11  ;;  %v1032_v22 = vunpack.c.l.bf16 %v2712_v13 }
 0x14a   :  { %2767 = vpow2.f32 %v2657_v31  ;;  %v2659_v19 = vmul.f32 -1.442695, %v1323_v28 }
 0x14b   :  { %v2661_v43 = vmul.f32 -1.442695, %v1325_v8  ;;  %v1324_v32 = vadd.f32 %v1313_v30, %v1032_v22 }
 0x14c   :  { %2769 = vpow2.f32 %v2659_v19 }
 0x14d   :  { %2771 = vtanh.f32 %v1320_v45 }
 0x153   :  { %v2764_v57 = vpop.eup %2763 }
 0x154   :  { %v1332_v6 = vadd.f32 1.0, %v2764_v57 }
 0x155   :  { %v2766_v42 = vpop.eup %2765 }
 0x156   :  { %2773 = vrcp.f32 %v1332_v6  ;;  %v1344_v27 = vadd.f32 1.0, %v2766_v42 }
 0x157   :  { %v2768_v60 = vpop.eup %2767  ;;  %2775 = vpow2.f32 %v2660_v21 }
 0x158   :  { %2777 = vrcp.f32 %v1344_v27  ;;  %v1333_v9 = vadd.f32 1.0, %v2768_v60 }
 0x159   :  { %v2770_v41 = vpop.eup %2769  ;;  %2779 = vpow2.f32 %v2661_v43 }
 0x15a   :  { %2781 = vrcp.f32 %v1333_v9  ;;  %v1345_v10 = vadd.f32 1.0, %v2770_v41  ;;  %v2772_v29 = vpop.eup %2771  ;;  %v1382_v9 = vunpack.c.l.bf16 %v3690_v20 }
 0x15b   :  { %2783 = vtanh.f32 %v1324_v32  ;;  %v4208_v32 = vmov 0  }
 0x15c   :  { %2785 = vrcp.f32 %v1345_v10 }
 0x163   :  { %v2774_v18 = vpop.eup %2773 }
 0x164   :  { %v2776_v31 = vpop.eup %2775  ;;  %v1366_v28 = vmul.f32 %v2774_v18, %v2772_v29  ;;  %v1383_v18 = vunpack.c.h.bf16 %v3690_v20  ;;  %v4209_v20 = vld [vmem:[#allocation21_spill] sm:$0xff] }
 0x165   :  { %v2778_v17 = vpop.eup %2777  ;;  %v1358_v36 = vadd.f32 1.0, %v2776_v31 }
 0x166   :  { %v2780_v19 = vpop.eup %2779  ;;  %v1364_v13 = vmul.f32 0.0, %v2778_v17 }
 0x167   :  { %v2782_v16 = vpop.eup %2781  ;;  %v1359_v11 = vadd.f32 1.0, %v2780_v19  ;;  %2787 = vrcp.f32 %v1358_v36  ;;  %v1386_v19 = vunpack.c.l.bf16 %v3698_v47 }
 0x168   :  { %v2784_v12 = vpop.eup %2783  ;;  %v3814_v21 = vadd.f32 %v1366_v28, %v1364_v13 }
 0x169   :  { %v2786_v30 = vpop.eup %2785  ;;  %v1367_v45 = vmul.f32 %v2784_v12, %v2782_v16 }
 0x16a   :  { %v1365_v23 = vmul.f32 0.0, %v2786_v30  ;;  %2789 = vtanh.f32 %v3814_v21  ;;  %v1387_v30 = vunpack.c.h.bf16 %v3698_v47 }
 0x16b   :  { %2791 = vrcp.f32 %v1359_v11 }
 0x16c   :  { %v3817_v8 = vadd.f32 %v1367_v45, %v1365_v23 }
 0x16e   :  { %2793 = vtanh.f32 %v3817_v8 }
 0x174   :  { %v2788_v57 = vpop.eup %2787 }
 0x177   :  { %v2790_v6 = vpop.eup %2789 }
 0x178   :  { %v2792_v42 = vpop.eup %2791  ;;  %v1372_v43 = vmul.f32 %v2790_v6, %v2788_v57 }
 0x17b   :  { %v2794_v22 = vpop.eup %2793 }
 0x17c   :  { %v1373_v27 = vmul.f32 %v2794_v22, %v2792_v42  ;;  %v1385_v42 = vunpack.c.h.bf16 %v4209_v20 }
 0x17e   :  { %v1374_v60 = vpack.c.bf16 %v1373_v27, %v1372_v43  ;;  %v1384_v43 = vunpack.c.l.bf16 %v4209_v20 }
 0x180   :  { %1423 = vmatmul.mubr.bf16.vlgmr.msra.gmra.mxu0 %v1374_v60  ;;  %1466 = vmatmul.mubr.bf16.vlgmr.msra.gmra.mxu1 %v1374_v60  ;;  %v4210_v60 = vld [vmem:[#allocation19_spill] sm:$0xff] }
 0x181   :  { %1549 = vmatpush1.bf16.msra.mxu0 %v3439_v0  ;;  %1592 = vmatpush1.bf16.msra.mxu1 %v3449_v2  ;;  %v1388_v47 = vunpack.c.l.bf16 %v4210_v60 }
 0x182   :  { %1550 = vmatprep.subr.bf16.mxu0 %v3444_v1  ;;  %1593 = vmatprep.subr.bf16.mxu1 %v3453_v3 }
 0x183   :  { %1580 = vmatprep.mubr.bf16.mxu0 %v4208_v32  ;;  %1623 = vmatprep.mubr.bf16.mxu1 %v4208_v32 }
 0x185   :  { %1551 = vmatpush1.bf16.msra.mxu0 %v3459_v7  ;;  %1594 = vmatpush1.bf16.msra.mxu1 %v3470_v35 }
 0x186   :  { %1552 = vmatprep.subr.bf16.mxu0 %v3465_v34  ;;  %1595 = vmatprep.subr.bf16.mxu1 %v3484_v38 }
 0x189   :  { %1553 = vmatpush1.bf16.msra.mxu0 %v3480_v37  ;;  %1596 = vmatpush1.bf16.msra.mxu1 %v3493_v56 }
 0x18a   :  { %1554 = vmatprep.subr.bf16.mxu0 %v3488_v39  ;;  %1597 = vmatprep.subr.bf16.mxu1 %v3497_v52 }
 0x18d   :  { %1555 = vmatpush1.bf16.msra.mxu0 %v3504_v54  ;;  %1598 = vmatpush1.bf16.msra.mxu1 %v3515_v55 }
 0x18e   :  { %1556 = vmatprep.subr.bf16.mxu0 %v3510_v53  ;;  %1599 = vmatprep.subr.bf16.mxu1 %v3528_v50 }
 0x191   :  { %1557 = vmatpush1.bf16.msra.mxu0 %v3524_v48  ;;  %1600 = vmatpush1.bf16.msra.mxu1 %v3538_v51 }
 0x192   :  { %1558 = vmatprep.subr.bf16.mxu0 %v3533_v49  ;;  %1601 = vmatprep.subr.bf16.mxu1 %v3542_v44 }
 0x195   :  { %1559 = vmatpush1.bf16.msra.mxu0 %v3549_v46  ;;  %1602 = vmatpush1.bf16.msra.mxu1 %v3560_v59 }
 0x196   :  { %1560 = vmatprep.subr.bf16.mxu0 %v3555_v58  ;;  %1603 = vmatprep.subr.bf16.mxu1 %v3573_v62 }
 0x199   :  { %1561 = vmatpush1.bf16.msra.mxu0 %v3569_v40  ;;  %1604 = vmatpush1.bf16.msra.mxu1 %v3583_v33 }
 0x19a   :  { %1562 = vmatprep.subr.bf16.mxu0 %v3579_v63  ;;  %1605 = vmatprep.subr.bf16.mxu1 %v3587_v24 }
 0x19d   :  { %1563 = vmatpush1.bf16.msra.mxu0 %v3595_v25  ;;  %1606 = vmatpush1.bf16.msra.mxu1 %v3601_v26 }
 0x19e   :  { %1706 = vmatprep.subr.bf16.mxu0 %v3428_v4  ;;  %1749 = vmatprep.subr.bf16.mxu1 %v3432_v5 }
 0x240   :  { %v1424_v41 = vpop.f32.mrf.mxu0  ;;  %v1467_v29 = vpop.f32.mrf.mxu1 }
 0x241   :  { %v1476_v10 = vadd.f32 %v1424_v41, %v1382_v9  ;;  %v1389_v9 = vunpack.c.h.bf16 %v4210_v60  ;;  %v1478_v41 = vadd.f32 %v1467_v29, %v1384_v43 }
 0x242   :  { %v1426_v31 = vpop.f32.mrf.mxu0  ;;  %v1469_v36 = vpop.f32.mrf.mxu1 }
 0x243   :  { %v2662_v28 = vmul.f32 -1.442695, %v1476_v10  ;;  %v1477_v17 = vadd.f32 %v1426_v31, %v1383_v18  ;;  %v1479_v22 = vadd.f32 %v1469_v36, %v1385_v42 }
 0x244   :  { %v1428_v13 = vpop.f32.mrf.mxu0  ;;  %v1471_v57 = vpop.f32.mrf.mxu1 }
 0x245   :  { %2795 = vpow2.f32 %v2662_v28  ;;  %v2664_v16 = vmul.f32 -1.442695, %v1477_v17  ;;  %v1480_v12 = vadd.f32 %v1428_v13, %v1386_v19  ;;  %v2666_v10 = vmul.f32 -1.442695, %v1479_v22 }
 0x246   :  { %v1430_v11 = vpop.f32.mrf.mxu0  ;;  %v1473_v27 = vpop.f32.mrf.mxu1  ;;  %v1482_v28 = vadd.f32 %v1471_v57, %v1388_v47 }
 0x247   :  { %2797 = vpow2.f32 %v2664_v16  ;;  %v2663_v23 = vmul.f32 -1.442695, %v1480_v12  ;;  %v1481_v45 = vadd.f32 %v1430_v11, %v1387_v30  ;;  %v1483_v18 = vadd.f32 %v1473_v27, %v1389_v9 }
 0x249   :  { %2799 = vpow2.f32 %v2663_v23  ;;  %v2665_v6 = vmul.f32 -1.442695, %v1481_v45  ;;  %v2667_v13 = vmul.f32 -1.442695, %v1483_v18 }
 0x24b   :  { %2801 = vpow2.f32 %v2665_v6 }
 0x24c   :  { %2803 = vtanh.f32 %v1478_v41 }
 0x24d   :  { %2805 = vpow2.f32 %v2666_v10 }
 0x252   :  { %v2796_v31 = vpop.eup %2795 }
 0x253   :  { %v1490_v17 = vadd.f32 1.0, %v2796_v31 }
 0x254   :  { %v2798_v19 = vpop.eup %2797 }
 0x255   :  { %2807 = vrcp.f32 %v1490_v17  ;;  %v1502_v16 = vadd.f32 1.0, %v2798_v19 }
 0x256   :  { %v2800_v36 = vpop.eup %2799  ;;  %2809 = vtanh.f32 %v1482_v28 }
 0x257   :  { %2811 = vrcp.f32 %v1502_v16  ;;  %v1491_v12 = vadd.f32 1.0, %v2800_v36 }
 0x258   :  { %v2802_v30 = vpop.eup %2801  ;;  %2813 = vpow2.f32 %v2667_v13 }
 0x259   :  { %2815 = vrcp.f32 %v1491_v12  ;;  %v1503_v29 = vadd.f32 1.0, %v2802_v30  ;;  %v2804_v11 = vpop.eup %2803 }
 0x25a   :  { %v2806_v23 = vpop.eup %2805 }
 0x25b   :  { %2817 = vrcp.f32 %v1503_v29  ;;  %v1516_v27 = vadd.f32 1.0, %v2806_v23 }
 0x25d   :  { %2819 = vrcp.f32 %v1516_v27 }
 0x262   :  { %v2808_v45 = vpop.eup %2807 }
 0x263   :  { %v2810_v57 = vpop.eup %2809  ;;  %v1524_v6 = vmul.f32 %v2808_v45, %v2804_v11 }
 0x264   :  { %v2812_v20 = vpop.eup %2811 }
 0x265   :  { %v2814_v42 = vpop.eup %2813  ;;  %v1522_v22 = vmul.f32 %v2812_v20, %v3814_v21 }
 0x266   :  { %v2816_v43 = vpop.eup %2815  ;;  %v1517_v10 = vadd.f32 1.0, %v2814_v42 }
 0x267   :  { %v3863_v60 = vadd.f32 %v1524_v6, %v1522_v22  ;;  %v1525_v9 = vmul.f32 %v2816_v43, %v2810_v57  ;;  %v4212_v6 = vld [vmem:[#allocation17_spill] sm:$0xff] }
 0x268   :  { %v2818_v41 = vpop.eup %2817  ;;  %v1544_v20 = vunpack.c.l.bf16 %v4212_v6 }
 0x269   :  { %v1523_v47 = vmul.f32 %v2818_v41, %v3817_v8  ;;  %2821 = vtanh.f32 %v3863_v60  ;;  %v4211_v8 = vld [vmem:[#allocation22_spill] sm:$0xff] }
 0x26a   :  { %2823 = vrcp.f32 %v1517_v10  ;;  %v2820_v31 = vpop.eup %2819  ;;  %v1540_v36 = vunpack.c.l.bf16 %v4211_v8  ;;  %v1541_v11 = vunpack.c.h.bf16 %v4211_v8  ;;  %v4214_v8 = vld [vmem:[#allocation15_spill] sm:$0xff] }
 0x26b   :  { %v3866_v18 = vadd.f32 %v1525_v9, %v1523_v47  ;;  %v1545_v9 = vunpack.c.h.bf16 %v4212_v6 }
 0x26d   :  { %2825 = vtanh.f32 %v3866_v18 }
 0x276   :  { %v2822_v28 = vpop.eup %2821 }
 0x277   :  { %v2824_v21 = vpop.eup %2823  ;;  %v1530_v19 = vmul.f32 %v2822_v28, %v2820_v31 }
 0x27a   :  { %v2826_v17 = vpop.eup %2825 }
 0x27b   :  { %v1531_v13 = vmul.f32 %v2826_v17, %v2824_v21  ;;  %v4213_v21 = vld [vmem:[#allocation20_spill] sm:$0xff] }
 0x27c   :  { %v1543_v17 = vunpack.c.h.bf16 %v4213_v21 }
 0x27d   :  { %v1532_v16 = vpack.c.bf16 %v1531_v13, %v1530_v19  ;;  %v1542_v13 = vunpack.c.l.bf16 %v4213_v21 }
 0x27f   :  { %1581 = vmatmul.mubr.bf16.vlgmr.msra.gmra.mxu0 %v1532_v16  ;;  %1624 = vmatmul.mubr.bf16.vlgmr.msra.gmra.mxu1 %v1532_v16 }
 0x280   :  { %1707 = vmatpush1.bf16.msra.mxu0 %v3439_v0  ;;  %1750 = vmatpush1.bf16.msra.mxu1 %v3449_v2 }
 0x281   :  { %1708 = vmatprep.subr.bf16.mxu0 %v3444_v1  ;;  %1751 = vmatprep.subr.bf16.mxu1 %v3453_v3 }
 0x282   :  { %1738 = vmatprep.mubr.bf16.mxu0 %v4208_v32  ;;  %1781 = vmatprep.mubr.bf16.mxu1 %v4208_v32 }
 0x284   :  { %1709 = vmatpush1.bf16.msra.mxu0 %v3459_v7  ;;  %1752 = vmatpush1.bf16.msra.mxu1 %v3470_v35 }
 0x285   :  { %1710 = vmatprep.subr.bf16.mxu0 %v3465_v34  ;;  %1753 = vmatprep.subr.bf16.mxu1 %v3484_v38 }
 0x288   :  { %1711 = vmatpush1.bf16.msra.mxu0 %v3480_v37  ;;  %1754 = vmatpush1.bf16.msra.mxu1 %v3493_v56 }
 0x289   :  { %1712 = vmatprep.subr.bf16.mxu0 %v3488_v39  ;;  %1755 = vmatprep.subr.bf16.mxu1 %v3497_v52 }
 0x28c   :  { %1713 = vmatpush1.bf16.msra.mxu0 %v3504_v54  ;;  %1756 = vmatpush1.bf16.msra.mxu1 %v3515_v55 }
 0x28d   :  { %1714 = vmatprep.subr.bf16.mxu0 %v3510_v53  ;;  %1757 = vmatprep.subr.bf16.mxu1 %v3528_v50 }
 0x290   :  { %1715 = vmatpush1.bf16.msra.mxu0 %v3524_v48  ;;  %1758 = vmatpush1.bf16.msra.mxu1 %v3538_v51 }
 0x291   :  { %1716 = vmatprep.subr.bf16.mxu0 %v3533_v49  ;;  %1759 = vmatprep.subr.bf16.mxu1 %v3542_v44 }
 0x294   :  { %1717 = vmatpush1.bf16.msra.mxu0 %v3549_v46  ;;  %1760 = vmatpush1.bf16.msra.mxu1 %v3560_v59 }
 0x295   :  { %1718 = vmatprep.subr.bf16.mxu0 %v3555_v58  ;;  %1761 = vmatprep.subr.bf16.mxu1 %v3573_v62 }
 0x298   :  { %1719 = vmatpush1.bf16.msra.mxu0 %v3569_v40  ;;  %1762 = vmatpush1.bf16.msra.mxu1 %v3583_v33 }
 0x299   :  { %1720 = vmatprep.subr.bf16.mxu0 %v3579_v63  ;;  %1763 = vmatprep.subr.bf16.mxu1 %v3587_v24 }
 0x29c   :  { %1721 = vmatpush1.bf16.msra.mxu0 %v3595_v25  ;;  %1764 = vmatpush1.bf16.msra.mxu1 %v3601_v26 }
 0x29d   :  { %1864 = vmatprep.subr.bf16.mxu0 %v3428_v4  ;;  %1907 = vmatprep.subr.bf16.mxu1 %v3432_v5 }
 0x33f   :  { %v1582_v12 = vpop.f32.mrf.mxu0  ;;  %v1625_v29 = vpop.f32.mrf.mxu1 }
 0x340   :  { %v1634_v30 = vadd.f32 %v1582_v12, %v1540_v36  ;;  %v1547_v36 = vunpack.c.h.bf16 %v4214_v8  ;;  %v1636_v12 = vadd.f32 %v1625_v29, %v1542_v13 }
 0x341   :  { %v1584_v23 = vpop.f32.mrf.mxu0  ;;  %v1627_v43 = vpop.f32.mrf.mxu1 }
 0x342   :  { %v2668_v45 = vmul.f32 -1.442695, %v1634_v30  ;;  %v1635_v57 = vadd.f32 %v1584_v23, %v1541_v11  ;;  %v1637_v19 = vadd.f32 %v1627_v43, %v1543_v17  ;;  %v1546_v11 = vunpack.c.l.bf16 %v4214_v8 }
 0x343   :  { %v1586_v42 = vpop.f32.mrf.mxu0  ;;  %v1629_v31 = vpop.f32.mrf.mxu1 }
 0x344   :  { %2827 = vpow2.f32 %v2668_v45  ;;  %v2670_v22 = vmul.f32 -1.442695, %v1635_v57  ;;  %v1638_v27 = vadd.f32 %v1586_v42, %v1544_v20  ;;  %v2672_v30 = vmul.f32 -1.442695, %v1637_v19 }
 0x345   :  { %v1588_v41 = vpop.f32.mrf.mxu0  ;;  %v1631_v16 = vpop.f32.mrf.mxu1  ;;  %v1640_v57 = vadd.f32 %v1629_v31, %v1546_v11 }
 0x346   :  { %2829 = vpow2.f32 %v2670_v22  ;;  %v2669_v10 = vmul.f32 -1.442695, %v1638_v27  ;;  %v1639_v47 = vadd.f32 %v1588_v41, %v1545_v9  ;;  %v1641_v23 = vadd.f32 %v1631_v16, %v1547_v36 }
 0x348   :  { %2831 = vpow2.f32 %v2669_v10  ;;  %v2671_v28 = vmul.f32 -1.442695, %v1639_v47  ;;  %v2673_v42 = vmul.f32 -1.442695, %v1641_v23 }
 0x34a   :  { %2833 = vpow2.f32 %v2671_v28 }
 0x34b   :  { %2835 = vtanh.f32 %v1636_v12 }
 0x34c   :  { %2837 = vpow2.f32 %v2672_v30 }
 0x351   :  { %v2828_v45 = vpop.eup %2827 }
 0x352   :  { %v1648_v6 = vadd.f32 1.0, %v2828_v45 }
 0x353   :  { %v2830_v20 = vpop.eup %2829 }
 0x354   :  { %2839 = vrcp.f32 %v1648_v6  ;;  %v1660_v22 = vadd.f32 1.0, %v2830_v20 }
 0x355   :  { %v2832_v43 = vpop.eup %2831  ;;  %2841 = vtanh.f32 %v1640_v57 }
 0x356   :  { %2843 = vrcp.f32 %v1660_v22  ;;  %v1649_v27 = vadd.f32 1.0, %v2832_v43 }
 0x357   :  { %v2834_v9 = vpop.eup %2833  ;;  %2845 = vpow2.f32 %v2673_v42 }
 0x358   :  { %2847 = vrcp.f32 %v1649_v27  ;;  %v1661_v29 = vadd.f32 1.0, %v2834_v9  ;;  %v2836_v41 = vpop.eup %2835 }
 0x359   :  { %v2838_v10 = vpop.eup %2837 }
 0x35a   :  { %2849 = vrcp.f32 %v1661_v29  ;;  %v1674_v16 = vadd.f32 1.0, %v2838_v10 }
 0x35c   :  { %2851 = vrcp.f32 %v1674_v16 }
 0x361   :  { %v2840_v47 = vpop.eup %2839 }
 0x362   :  { %v2842_v31 = vpop.eup %2841  ;;  %v1682_v28 = vmul.f32 %v2840_v47, %v2836_v41 }
 0x363   :  { %v2844_v21 = vpop.eup %2843 }
 0x364   :  { %v2846_v17 = vpop.eup %2845  ;;  %v1680_v19 = vmul.f32 %v2844_v21, %v3863_v60 }
 0x365   :  { %v2848_v13 = vpop.eup %2847  ;;  %v1675_v30 = vadd.f32 1.0, %v2846_v17 }
 0x366   :  { %v3913_v8 = vadd.f32 %v1682_v28, %v1680_v19  ;;  %v1683_v36 = vmul.f32 %v2848_v13, %v2842_v31  ;;  %v4216_v28 = vld [vmem:[#allocation23_spill] sm:$0xff] }
 0x367   :  { %v2850_v12 = vpop.eup %2849  ;;  %v1702_v21 = vunpack.c.l.bf16 %v4216_v28 }
 0x368   :  { %v1681_v11 = vmul.f32 %v2850_v12, %v3866_v18  ;;  %2853 = vtanh.f32 %v3913_v8  ;;  %v4215_v18 = vld [vmem:[#allocation18_spill] sm:$0xff] }
 0x369   :  { %2855 = vrcp.f32 %v1675_v30  ;;  %v2852_v45 = vpop.eup %2851  ;;  %v1698_v43 = vunpack.c.l.bf16 %v4215_v18  ;;  %v1699_v41 = vunpack.c.h.bf16 %v4215_v18  ;;  %v4218_v18 = vld [vmem:[#allocation24_spill] sm:$0xff] }
 0x36a   :  { %v3916_v23 = vadd.f32 %v1683_v36, %v1681_v11  ;;  %v1703_v36 = vunpack.c.h.bf16 %v4216_v28 }
 0x36c   :  { %2857 = vtanh.f32 %v3916_v23 }
 0x375   :  { %v2854_v57 = vpop.eup %2853 }
 0x376   :  { %v2856_v60 = vpop.eup %2855  ;;  %v1688_v20 = vmul.f32 %v2854_v57, %v2852_v45 }
 0x379   :  { %v2858_v6 = vpop.eup %2857 }
 0x37a   :  { %v1689_v42 = vmul.f32 %v2858_v6, %v2856_v60  ;;  %v4217_v60 = vld [vmem:[#allocation16_spill] sm:$0xff] }
 0x37b   :  { %v1701_v6 = vunpack.c.h.bf16 %v4217_v60 }
 0x37c   :  { %v1690_v22 = vpack.c.bf16 %v1689_v42, %v1688_v20  ;;  %v1700_v42 = vunpack.c.l.bf16 %v4217_v60 }
 0x37e   :  { %1739 = vmatmul.mubr.bf16.vlgmr.msra.gmra.mxu0 %v1690_v22  ;;  %1782 = vmatmul.mubr.bf16.vlgmr.msra.gmra.mxu1 %v1690_v22 }
 0x37f   :  { %1865 = vmatpush1.bf16.msra.mxu0 %v3439_v0  ;;  %1908 = vmatpush1.bf16.msra.mxu1 %v3449_v2 }
 0x380   :  { %1866 = vmatprep.subr.bf16.mxu0 %v3444_v1  ;;  %1909 = vmatprep.subr.bf16.mxu1 %v3453_v3 }
 0x381   :  { %1896 = vmatprep.mubr.bf16.mxu0 %v4208_v32  ;;  %1939 = vmatprep.mubr.bf16.mxu1 %v4208_v32 }
 0x383   :  { %1867 = vmatpush1.bf16.msra.mxu0 %v3459_v7  ;;  %1910 = vmatpush1.bf16.msra.mxu1 %v3470_v35 }
 0x384   :  { %1868 = vmatprep.subr.bf16.mxu0 %v3465_v34  ;;  %1911 = vmatprep.subr.bf16.mxu1 %v3484_v38 }
 0x387   :  { %1869 = vmatpush1.bf16.msra.mxu0 %v3480_v37  ;;  %1912 = vmatpush1.bf16.msra.mxu1 %v3493_v56 }
 0x388   :  { %1870 = vmatprep.subr.bf16.mxu0 %v3488_v39  ;;  %1913 = vmatprep.subr.bf16.mxu1 %v3497_v52 }
 0x38b   :  { %1871 = vmatpush1.bf16.msra.mxu0 %v3504_v54  ;;  %1914 = vmatpush1.bf16.msra.mxu1 %v3515_v55 }
 0x38c   :  { %1872 = vmatprep.subr.bf16.mxu0 %v3510_v53  ;;  %1915 = vmatprep.subr.bf16.mxu1 %v3528_v50 }
 0x38f   :  { %1873 = vmatpush1.bf16.msra.mxu0 %v3524_v48  ;;  %1916 = vmatpush1.bf16.msra.mxu1 %v3538_v51 }
 0x390   :  { %1874 = vmatprep.subr.bf16.mxu0 %v3533_v49  ;;  %1917 = vmatprep.subr.bf16.mxu1 %v3542_v44 }
 0x393   :  { %1875 = vmatpush1.bf16.msra.mxu0 %v3549_v46  ;;  %1918 = vmatpush1.bf16.msra.mxu1 %v3560_v59 }
 0x394   :  { %1876 = vmatprep.subr.bf16.mxu0 %v3555_v58  ;;  %1919 = vmatprep.subr.bf16.mxu1 %v3573_v62 }
 0x397   :  { %1877 = vmatpush1.bf16.msra.mxu0 %v3569_v40  ;;  %1920 = vmatpush1.bf16.msra.mxu1 %v3583_v33 }
 0x398   :  { %1878 = vmatprep.subr.bf16.mxu0 %v3579_v63  ;;  %1921 = vmatprep.subr.bf16.mxu1 %v3587_v24 }
 0x39b   :  { %1879 = vmatpush1.bf16.msra.mxu0 %v3595_v25  ;;  %1922 = vmatpush1.bf16.msra.mxu1 %v3601_v26 }
 0x39c   :  { %2022 = vmatprep.subr.bf16.mxu0 %v3428_v4  ;;  %2065 = vmatprep.subr.bf16.mxu1 %v3432_v5 }
 0x43e   :  { %v1740_v27 = vpop.f32.mrf.mxu0  ;;  %v1783_v29 = vpop.f32.mrf.mxu1 }
 0x43f   :  { %v1792_v9 = vadd.f32 %v1740_v27, %v1698_v43  ;;  %v1705_v43 = vunpack.c.h.bf16 %v4218_v18  ;;  %v1794_v27 = vadd.f32 %v1783_v29, %v1700_v42 }
 0x440   :  { %v1742_v10 = vpop.f32.mrf.mxu0  ;;  %v1785_v13 = vpop.f32.mrf.mxu1 }
 0x441   :  { %v2674_v47 = vmul.f32 -1.442695, %v1792_v9  ;;  %v1793_v31 = vadd.f32 %v1742_v10, %v1699_v41  ;;  %v1795_v20 = vadd.f32 %v1785_v13, %v1701_v6  ;;  %v1704_v41 = vunpack.c.l.bf16 %v4218_v18 }
 0x442   :  { %v1744_v17 = vpop.f32.mrf.mxu0  ;;  %v1787_v45 = vpop.f32.mrf.mxu1 }
 0x443   :  { %2859 = vpow2.f32 %v2674_v47  ;;  %v2676_v19 = vmul.f32 -1.442695, %v1793_v31  ;;  %v1796_v16 = vadd.f32 %v1744_v17, %v1702_v21  ;;  %v2678_v9 = vmul.f32 -1.442695, %v1795_v20 }
 0x444   :  { %v1746_v12 = vpop.f32.mrf.mxu0  ;;  %v1789_v22 = vpop.f32.mrf.mxu1  ;;  %v1798_v31 = vadd.f32 %v1787_v45, %v1704_v41 }
 0x445   :  { %2861 = vpow2.f32 %v2676_v19  ;;  %v2675_v30 = vmul.f32 -1.442695, %v1796_v16  ;;  %v1797_v11 = vadd.f32 %v1746_v12, %v1703_v36  ;;  %v1799_v10 = vadd.f32 %v1789_v22, %v1705_v43 }
 0x447   :  { %2863 = vpow2.f32 %v2675_v30  ;;  %v2677_v57 = vmul.f32 -1.442695, %v1797_v11  ;;  %v2679_v17 = vmul.f32 -1.442695, %v1799_v10 }
 0x449   :  { %2865 = vpow2.f32 %v2677_v57 }
 0x44a   :  { %2867 = vtanh.f32 %v1794_v27 }
 0x44b   :  { %2869 = vpow2.f32 %v2678_v9 }
 0x450   :  { %v2860_v47 = vpop.eup %2859 }
 0x451   :  { %v1806_v28 = vadd.f32 1.0, %v2860_v47 }
 0x452   :  { %v2862_v21 = vpop.eup %2861 }
 0x453   :  { %2871 = vrcp.f32 %v1806_v28  ;;  %v1818_v19 = vadd.f32 1.0, %v2862_v21 }
 0x454   :  { %v2864_v13 = vpop.eup %2863  ;;  %2873 = vtanh.f32 %v1798_v31 }
 0x455   :  { %2875 = vrcp.f32 %v1818_v19  ;;  %v1807_v16 = vadd.f32 1.0, %v2864_v13 }
 0x456   :  { %v2866_v36 = vpop.eup %2865  ;;  %2877 = vpow2.f32 %v2679_v17 }
 0x457   :  { %2879 = vrcp.f32 %v1807_v16  ;;  %v1819_v29 = vadd.f32 1.0, %v2866_v36  ;;  %v2868_v12 = vpop.eup %2867 }
 0x458   :  { %v2870_v30 = vpop.eup %2869 }
 0x459   :  { %2881 = vrcp.f32 %v1819_v29  ;;  %v1832_v22 = vadd.f32 1.0, %v2870_v30 }
 0x45b   :  { %2883 = vrcp.f32 %v1832_v22 }
 0x460   :  { %v2872_v11 = vpop.eup %2871 }
 0x461   :  { %v2874_v45 = vpop.eup %2873  ;;  %v1840_v57 = vmul.f32 %v2872_v11, %v2868_v12 }
 0x462   :  { %v2876_v60 = vpop.eup %2875 }
 0x463   :  { %v2878_v6 = vpop.eup %2877  ;;  %v1838_v20 = vmul.f32 %v2876_v60, %v3913_v8 }
 0x464   :  { %v2880_v42 = vpop.eup %2879  ;;  %v1833_v9 = vadd.f32 1.0, %v2878_v6 }
 0x465   :  { %v3963_v18 = vadd.f32 %v1840_v57, %v1838_v20  ;;  %v1841_v43 = vmul.f32 %v2880_v42, %v2874_v45  ;;  %v4220_v57 = vld [vmem:[#allocation27_spill] sm:$0xff] }
 0x466   :  { %v2882_v27 = vpop.eup %2881  ;;  %v1860_v60 = vunpack.c.l.bf16 %v4220_v57 }
 0x467   :  { %v1839_v41 = vmul.f32 %v2882_v27, %v3916_v23  ;;  %2885 = vtanh.f32 %v3963_v18  ;;  %v4219_v23 = vld [vmem:[#allocation25_spill] sm:$0xff] }
 0x468   :  { %2887 = vrcp.f32 %v1833_v9  ;;  %v2884_v47 = vpop.eup %2883  ;;  %v1856_v13 = vunpack.c.l.bf16 %v4219_v23  ;;  %v1857_v12 = vunpack.c.h.bf16 %v4219_v23  ;;  %v4222_v23 = vld [vmem:[#allocation28_spill] sm:$0xff] }
 0x469   :  { %v3966_v10 = vadd.f32 %v1841_v43, %v1839_v41  ;;  %v1861_v43 = vunpack.c.h.bf16 %v4220_v57 }
 0x46b   :  { %2889 = vtanh.f32 %v3966_v10 }
 0x474   :  { %v2886_v31 = vpop.eup %2885 }
 0x475   :  { %v2888_v8 = vpop.eup %2887  ;;  %v1846_v21 = vmul.f32 %v2886_v31, %v2884_v47 }
 0x478   :  { %v2890_v28 = vpop.eup %2889 }
 0x479   :  { %v1847_v17 = vmul.f32 %v2890_v28, %v2888_v8  ;;  %v4221_v8 = vld [vmem:[#allocation26_spill] sm:$0xff] }
 0x47a   :  { %v1859_v28 = vunpack.c.h.bf16 %v4221_v8 }
 0x47b   :  { %v1848_v19 = vpack.c.bf16 %v1847_v17, %v1846_v21  ;;  %v1858_v17 = vunpack.c.l.bf16 %v4221_v8 }
 0x47d   :  { %1897 = vmatmul.mubr.bf16.vlgmr.msra.gmra.mxu0 %v1848_v19  ;;  %1940 = vmatmul.mubr.bf16.vlgmr.msra.gmra.mxu1 %v1848_v19 }
 0x47e   :  { %2023 = vmatpush1.bf16.msra.mxu0 %v3439_v0  ;;  %2066 = vmatpush1.bf16.msra.mxu1 %v3449_v2 }
 0x47f   :  { %2024 = vmatprep.subr.bf16.mxu0 %v3444_v1  ;;  %2067 = vmatprep.subr.bf16.mxu1 %v3453_v3 }
 0x480   :  { %2054 = vmatprep.mubr.bf16.mxu0 %v4208_v32  ;;  %2097 = vmatprep.mubr.bf16.mxu1 %v4208_v32 }
 0x482   :  { %2025 = vmatpush1.bf16.msra.mxu0 %v3459_v7  ;;  %2068 = vmatpush1.bf16.msra.mxu1 %v3470_v35 }
 0x483   :  { %2026 = vmatprep.subr.bf16.mxu0 %v3465_v34  ;;  %2069 = vmatprep.subr.bf16.mxu1 %v3484_v38 }
 0x486   :  { %2027 = vmatpush1.bf16.msra.mxu0 %v3480_v37  ;;  %2070 = vmatpush1.bf16.msra.mxu1 %v3493_v56 }
 0x487   :  { %2028 = vmatprep.subr.bf16.mxu0 %v3488_v39  ;;  %2071 = vmatprep.subr.bf16.mxu1 %v3497_v52 }
 0x48a   :  { %2029 = vmatpush1.bf16.msra.mxu0 %v3504_v54  ;;  %2072 = vmatpush1.bf16.msra.mxu1 %v3515_v55 }
 0x48b   :  { %2030 = vmatprep.subr.bf16.mxu0 %v3510_v53  ;;  %2073 = vmatprep.subr.bf16.mxu1 %v3528_v50 }
 0x48e   :  { %2031 = vmatpush1.bf16.msra.mxu0 %v3524_v48  ;;  %2074 = vmatpush1.bf16.msra.mxu1 %v3538_v51 }
 0x48f   :  { %2032 = vmatprep.subr.bf16.mxu0 %v3533_v49  ;;  %2075 = vmatprep.subr.bf16.mxu1 %v3542_v44 }
 0x492   :  { %2033 = vmatpush1.bf16.msra.mxu0 %v3549_v46  ;;  %2076 = vmatpush1.bf16.msra.mxu1 %v3560_v59 }
 0x493   :  { %2034 = vmatprep.subr.bf16.mxu0 %v3555_v58  ;;  %2077 = vmatprep.subr.bf16.mxu1 %v3573_v62 }
 0x496   :  { %2035 = vmatpush1.bf16.msra.mxu0 %v3569_v40  ;;  %2078 = vmatpush1.bf16.msra.mxu1 %v3583_v33 }
 0x497   :  { %2036 = vmatprep.subr.bf16.mxu0 %v3579_v63  ;;  %2079 = vmatprep.subr.bf16.mxu1 %v3587_v24 }
 0x49a   :  { %2037 = vmatpush1.bf16.msra.mxu0 %v3595_v25  ;;  %2080 = vmatpush1.bf16.msra.mxu1 %v3601_v26 }
 0x49b   :  { %2180 = vmatprep.subr.bf16.mxu0 %v3428_v4  ;;  %2223 = vmatprep.subr.bf16.mxu1 %v3432_v5 }
 0x53d   :  { %v1898_v16 = vpop.f32.mrf.mxu0  ;;  %v1941_v29 = vpop.f32.mrf.mxu1 }
 0x53e   :  { %v1950_v36 = vadd.f32 %v1898_v16, %v1856_v13  ;;  %v1863_v13 = vunpack.c.h.bf16 %v4222_v23  ;;  %v1952_v16 = vadd.f32 %v1941_v29, %v1858_v17 }
 0x53f   :  { %v1900_v30 = vpop.f32.mrf.mxu0  ;;  %v1943_v42 = vpop.f32.mrf.mxu1 }
 0x540   :  { %v2680_v11 = vmul.f32 -1.442695, %v1950_v36  ;;  %v1951_v45 = vadd.f32 %v1900_v30, %v1857_v12  ;;  %v1953_v21 = vadd.f32 %v1943_v42, %v1859_v28  ;;  %v1862_v12 = vunpack.c.l.bf16 %v4222_v23 }
 0x541   :  { %v1902_v6 = vpop.f32.mrf.mxu0  ;;  %v1945_v47 = vpop.f32.mrf.mxu1 }
 0x542   :  { %2891 = vpow2.f32 %v2680_v11  ;;  %v2682_v20 = vmul.f32 -1.442695, %v1951_v45  ;;  %v1954_v22 = vadd.f32 %v1902_v6, %v1860_v60  ;;  %v2684_v36 = vmul.f32 -1.442695, %v1953_v21 }
 0x543   :  { %v1904_v27 = vpop.f32.mrf.mxu0  ;;  %v1947_v19 = vpop.f32.mrf.mxu1  ;;  %v1956_v45 = vadd.f32 %v1945_v47, %v1862_v12 }
 0x544   :  { %2893 = vpow2.f32 %v2682_v20  ;;  %v2681_v9 = vmul.f32 -1.442695, %v1954_v22  ;;  %v1955_v41 = vadd.f32 %v1904_v27, %v1861_v43  ;;  %v1957_v30 = vadd.f32 %v1947_v19, %v1863_v13 }
 0x546   :  { %2895 = vpow2.f32 %v2681_v9  ;;  %v2683_v31 = vmul.f32 -1.442695, %v1955_v41  ;;  %v2685_v6 = vmul.f32 -1.442695, %v1957_v30 }
 0x548   :  { %2897 = vpow2.f32 %v2683_v31 }
 0x549   :  { %2899 = vtanh.f32 %v1952_v16 }
 0x54a   :  { %2901 = vpow2.f32 %v2684_v36 }
 0x54f   :  { %v2892_v11 = vpop.eup %2891 }
 0x550   :  { %v1964_v57 = vadd.f32 1.0, %v2892_v11 }
 0x551   :  { %v2894_v60 = vpop.eup %2893 }
 0x552   :  { %2903 = vrcp.f32 %v1964_v57  ;;  %v1976_v20 = vadd.f32 1.0, %v2894_v60 }
 0x553   :  { %v2896_v42 = vpop.eup %2895  ;;  %2905 = vtanh.f32 %v1956_v45 }
 0x554   :  { %2907 = vrcp.f32 %v1976_v20  ;;  %v1965_v22 = vadd.f32 1.0, %v2896_v42 }
 0x555   :  { %v2898_v43 = vpop.eup %2897  ;;  %2909 = vpow2.f32 %v2685_v6 }
 0x556   :  { %2911 = vrcp.f32 %v1965_v22  ;;  %v1977_v29 = vadd.f32 1.0, %v2898_v43  ;;  %v2900_v27 = vpop.eup %2899 }
 0x557   :  { %v2902_v9 = vpop.eup %2901 }
 0x558   :  { %2913 = vrcp.f32 %v1977_v29  ;;  %v1990_v19 = vadd.f32 1.0, %v2902_v9 }
 0x55a   :  { %2915 = vrcp.f32 %v1990_v19 }
 0x55f   :  { %v2904_v41 = vpop.eup %2903 }
 0x560   :  { %v2906_v47 = vpop.eup %2905  ;;  %v1998_v31 = vmul.f32 %v2904_v41, %v2900_v27 }
 0x561   :  { %v2908_v8 = vpop.eup %2907 }
 0x562   :  { %v2910_v28 = vpop.eup %2909  ;;  %v1996_v21 = vmul.f32 %v2908_v8, %v3963_v18 }
 0x563   :  { %v2912_v17 = vpop.eup %2911  ;;  %v1991_v36 = vadd.f32 1.0, %v2910_v28 }
 0x564   :  { %v4013_v23 = vadd.f32 %v1998_v31, %v1996_v21  ;;  %v1999_v13 = vmul.f32 %v2912_v17, %v2906_v47  ;;  %v4224_v31 = vld [vmem:[#allocation31_spill] sm:$0xff] }
 0x565   :  { %v2914_v16 = vpop.eup %2913  ;;  %v2018_v8 = vunpack.c.l.bf16 %v4224_v31 }
 0x566   :  { %v1997_v12 = vmul.f32 %v2914_v16, %v3966_v10  ;;  %2917 = vtanh.f32 %v4013_v23  ;;  %v4223_v10 = vld [vmem:[#allocation29_spill] sm:$0xff] }
 0x567   :  { %2919 = vrcp.f32 %v1991_v36  ;;  %v2916_v11 = vpop.eup %2915  ;;  %v2014_v42 = vunpack.c.l.bf16 %v4223_v10  ;;  %v2015_v27 = vunpack.c.h.bf16 %v4223_v10 }
 0x568   :  { %v4016_v30 = vadd.f32 %v1999_v13, %v1997_v12 }
 0x56a   :  { %2921 = vtanh.f32 %v4016_v30 }
 0x573   :  { %v2918_v45 = vpop.eup %2917 }
 0x574   :  { %v2920_v18 = vpop.eup %2919  ;;  %v2004_v60 = vmul.f32 %v2918_v45, %v2916_v11  ;;  %v4225_v11 = vld [vmem:[#allocation30_spill] sm:$0xff] }
 0x575   :  { %v2017_v45 = vunpack.c.h.bf16 %v4225_v11 }
 0x577   :  { %v2922_v57 = vpop.eup %2921 }
 0x578   :  { %v2005_v6 = vmul.f32 %v2922_v57, %v2920_v18  ;;  %v2016_v57 = vunpack.c.l.bf16 %v4225_v11 }
 0x57a   :  { %v2006_v20 = vpack.c.bf16 %v2005_v6, %v2004_v60  ;;  %v4226_v6 = vld [vmem:[#allocation32_spill] sm:$0xff] }
 0x57c   :  { %2055 = vmatmul.mubr.bf16.vlgmr.msra.gmra.mxu0 %v2006_v20  ;;  %2098 = vmatmul.mubr.bf16.vlgmr.msra.gmra.mxu1 %v2006_v20  ;;  %v2021_v20 = vunpack.c.h.bf16 %v4226_v6 }
 0x57d   :  { %2181 = vmatpush1.bf16.msra.mxu0 %v3439_v0  ;;  %2224 = vmatpush1.bf16.msra.mxu1 %v3449_v2 }
 0x57e   :  { %2182 = vmatprep.subr.bf16.mxu0 %v3444_v1  ;;  %2225 = vmatprep.subr.bf16.mxu1 %v3453_v3 }
 0x57f   :  { %2212 = vmatprep.mubr.bf16.mxu0 %v4208_v32  ;;  %2255 = vmatprep.mubr.bf16.mxu1 %v4208_v32 }
 0x581   :  { %2183 = vmatpush1.bf16.msra.mxu0 %v3459_v7  ;;  %2226 = vmatpush1.bf16.msra.mxu1 %v3470_v35 }
 0x582   :  { %2184 = vmatprep.subr.bf16.mxu0 %v3465_v34  ;;  %2227 = vmatprep.subr.bf16.mxu1 %v3484_v38 }
 0x585   :  { %2185 = vmatpush1.bf16.msra.mxu0 %v3480_v37  ;;  %2228 = vmatpush1.bf16.msra.mxu1 %v3493_v56 }
 0x586   :  { %2186 = vmatprep.subr.bf16.mxu0 %v3488_v39  ;;  %2229 = vmatprep.subr.bf16.mxu1 %v3497_v52 }
 0x589   :  { %2187 = vmatpush1.bf16.msra.mxu0 %v3504_v54  ;;  %2230 = vmatpush1.bf16.msra.mxu1 %v3515_v55 }
 0x58a   :  { %2188 = vmatprep.subr.bf16.mxu0 %v3510_v53  ;;  %2231 = vmatprep.subr.bf16.mxu1 %v3528_v50 }
 0x58d   :  { %2189 = vmatpush1.bf16.msra.mxu0 %v3524_v48  ;;  %2232 = vmatpush1.bf16.msra.mxu1 %v3538_v51 }
 0x58e   :  { %2190 = vmatprep.subr.bf16.mxu0 %v3533_v49  ;;  %2233 = vmatprep.subr.bf16.mxu1 %v3542_v44 }
 0x591   :  { %2191 = vmatpush1.bf16.msra.mxu0 %v3549_v46  ;;  %2234 = vmatpush1.bf16.msra.mxu1 %v3560_v59 }
 0x592   :  { %2192 = vmatprep.subr.bf16.mxu0 %v3555_v58  ;;  %2235 = vmatprep.subr.bf16.mxu1 %v3573_v62 }
 0x595   :  { %2193 = vmatpush1.bf16.msra.mxu0 %v3569_v40  ;;  %2236 = vmatpush1.bf16.msra.mxu1 %v3583_v33 }
 0x596   :  { %2194 = vmatprep.subr.bf16.mxu0 %v3579_v63  ;;  %2237 = vmatprep.subr.bf16.mxu1 %v3587_v24 }
 0x599   :  { %2195 = vmatpush1.bf16.msra.mxu0 %v3595_v25  ;;  %2238 = vmatpush1.bf16.msra.mxu1 %v3601_v26 }
 0x59a   :  { %2338 = vmatprep.subr.bf16.mxu0 %v3428_v4  ;;  %2381 = vmatprep.subr.bf16.mxu1 %v3432_v5  ;;  %v2019_v4 = vunpack.c.h.bf16 %v4224_v31 }
 0x63c   :  { %v2056_v22 = vpop.f32.mrf.mxu0  ;;  %v2099_v29 = vpop.f32.mrf.mxu1 }
 0x63d   :  { %v2108_v43 = vadd.f32 %v2056_v22, %v2014_v42  ;;  %v2110_v10 = vadd.f32 %v2099_v29, %v2016_v57  ;;  %v2020_v22 = vunpack.c.l.bf16 %v4226_v6 }
 0x63e   :  { %v2058_v9 = vpop.f32.mrf.mxu0  ;;  %v2101_v17 = vpop.f32.mrf.mxu1 }
 0x63f   :  { %v2686_v41 = vmul.f32 -1.442695, %v2108_v43  ;;  %v2109_v47 = vadd.f32 %v2058_v9, %v2015_v27  ;;  %v2111_v18 = vadd.f32 %v2101_v17, %v2017_v45 }
 0x640   :  { %v2060_v28 = vpop.f32.mrf.mxu0  ;;  %v2103_v36 = vpop.f32.mrf.mxu1 }
 0x641   :  { %2923 = vpow2.f32 %v2686_v41  ;;  %v2688_v21 = vmul.f32 -1.442695, %v2109_v47  ;;  %v2112_v19 = vadd.f32 %v2060_v28, %v2018_v8  ;;  %v2690_v42 = vmul.f32 -1.442695, %v2111_v18 }
 0x642   :  { %v2062_v5 = vpop.f32.mrf.mxu0  ;;  %v2105_v60 = vpop.f32.mrf.mxu1  ;;  %v2114_v9 = vadd.f32 %v2103_v36, %v2020_v22 }
 0x643   :  { %2925 = vpow2.f32 %v2688_v21  ;;  %v2687_v13 = vmul.f32 -1.442695, %v2112_v19  ;;  %v2113_v16 = vadd.f32 %v2062_v5, %v2019_v4  ;;  %v2115_v43 = vadd.f32 %v2105_v60, %v2021_v20 }
 0x645   :  { %2927 = vpow2.f32 %v2687_v13  ;;  %v2689_v12 = vmul.f32 -1.442695, %v2113_v16  ;;  %v2691_v31 = vmul.f32 -1.442695, %v2115_v43 }
 0x647   :  { %2929 = vpow2.f32 %v2689_v12 }
 0x648   :  { %2931 = vtanh.f32 %v2110_v10 }
 0x649   :  { %2933 = vpow2.f32 %v2690_v42 }
 0x64e   :  { %v2924_v27 = vpop.eup %2923 }
 0x64f   :  { %v2122_v41 = vadd.f32 1.0, %v2924_v27 }
 0x650   :  { %v2926_v47 = vpop.eup %2925 }
 0x651   :  { %2935 = vrcp.f32 %v2122_v41  ;;  %v2134_v8 = vadd.f32 1.0, %v2926_v47 }
 0x652   :  { %v2928_v28 = vpop.eup %2927  ;;  %2937 = vtanh.f32 %v2114_v9 }
 0x653   :  { %2939 = vrcp.f32 %v2134_v8  ;;  %v2123_v21 = vadd.f32 1.0, %v2928_v28 }
 0x654   :  { %v2930_v17 = vpop.eup %2929  ;;  %2941 = vpow2.f32 %v2691_v31 }
 0x655   :  { %2943 = vrcp.f32 %v2123_v21  ;;  %v2135_v29 = vadd.f32 1.0, %v2930_v17  ;;  %v2932_v19 = vpop.eup %2931 }
 0x656   :  { %v2934_v4 = vpop.eup %2933 }
 0x657   :  { %2945 = vrcp.f32 %v2135_v29  ;;  %v2148_v18 = vadd.f32 1.0, %v2934_v4 }
 0x659   :  { %2947 = vrcp.f32 %v2148_v18 }
 0x65e   :  { %v2936_v5 = vpop.eup %2935 }
 0x65f   :  { %v2938_v13 = vpop.eup %2937  ;;  %v2156_v16 = vmul.f32 %v2936_v5, %v2932_v19 }
 0x660   :  { %v2940_v36 = vpop.eup %2939 }
 0x661   :  { %v2942_v12 = vpop.eup %2941  ;;  %v2154_v11 = vmul.f32 %v2940_v36, %v4013_v23 }
 0x662   :  { %v2944_v45 = vpop.eup %2943  ;;  %v2149_v20 = vadd.f32 1.0, %v2942_v12 }
 0x663   :  { %v4063_v57 = vadd.f32 %v2156_v16, %v2154_v11  ;;  %v2157_v60 = vmul.f32 %v2944_v45, %v2938_v13 }
 0x664   :  { %v2946_v6 = vpop.eup %2945 }
 0x665   :  { %v2155_v10 = vmul.f32 %v2946_v6, %v4016_v30  ;;  %2949 = vtanh.f32 %v4063_v57 }
 0x666   :  { %2951 = vrcp.f32 %v2149_v20  ;;  %v2948_v22 = vpop.eup %2947 }
 0x667   :  { %v4066_v42 = vadd.f32 %v2157_v60, %v2155_v10 }
 0x669   :  { %2953 = vtanh.f32 %v4066_v42 }
 0x672   :  { %v2950_v43 = vpop.eup %2949 }
 0x673   :  { %v2952_v23 = vpop.eup %2951  ;;  %v2162_v9 = vmul.f32 %v2950_v43, %v2948_v22 }
 0x676   :  { %v2954_v27 = vpop.eup %2953 }
 0x677   :  { %v2163_v41 = vmul.f32 %v2954_v27, %v2952_v23 }
 0x679   :  { %v2164_v47 = vpack.c.bf16 %v2163_v41, %v2162_v9 }
 0x67b   :  { %2213 = vmatmul.mubr.bf16.vlgmr.msra.gmra.mxu0 %v2164_v47  ;;  %2256 = vmatmul.mubr.bf16.vlgmr.msra.gmra.mxu1 %v2164_v47 }
 0x67c   :  { %2339 = vmatpush1.bf16.msra.mxu0 %v3439_v0  ;;  %2382 = vmatpush1.bf16.msra.mxu1 %v3449_v2  ;;  %v4227_v0 = vld [vmem:[#allocation33_spill] sm:$0xff] }
 0x67d   :  { %2340 = vmatprep.subr.bf16.mxu0 %v3444_v1  ;;  %2383 = vmatprep.subr.bf16.mxu1 %v3453_v3  ;;  %v2172_v1 = vunpack.c.l.bf16 %v4227_v0 }
 0x67e   :  { %2370 = vmatprep.mubr.bf16.mxu0 %v4208_v32  ;;  %2413 = vmatprep.mubr.bf16.mxu1 %v4208_v32 }
 0x680   :  { %2341 = vmatpush1.bf16.msra.mxu0 %v3459_v7  ;;  %2384 = vmatpush1.bf16.msra.mxu1 %v3470_v35 }
 0x681   :  { %2342 = vmatprep.subr.bf16.mxu0 %v3465_v34  ;;  %2385 = vmatprep.subr.bf16.mxu1 %v3484_v38  ;;  %v2173_v34 = vunpack.c.h.bf16 %v4227_v0 }
 0x684   :  { %2343 = vmatpush1.bf16.msra.mxu0 %v3480_v37  ;;  %2386 = vmatpush1.bf16.msra.mxu1 %v3493_v56 }
 0x685   :  { %2344 = vmatprep.subr.bf16.mxu0 %v3488_v39  ;;  %2387 = vmatprep.subr.bf16.mxu1 %v3497_v52  ;;  %v4228_v39 = vld [vmem:[#allocation35_spill] sm:$0xff] }
 0x686   :  { %v2176_v56 = vunpack.c.l.bf16 %v4228_v39 }
 0x688   :  { %2345 = vmatpush1.bf16.msra.mxu0 %v3504_v54  ;;  %2388 = vmatpush1.bf16.msra.mxu1 %v3515_v55 }
 0x689   :  { %2346 = vmatprep.subr.bf16.mxu0 %v3510_v53  ;;  %2389 = vmatprep.subr.bf16.mxu1 %v3528_v50 }
 0x68c   :  { %2347 = vmatpush1.bf16.msra.mxu0 %v3524_v48  ;;  %2390 = vmatpush1.bf16.msra.mxu1 %v3538_v51  ;;  %v2177_v48 = vunpack.c.h.bf16 %v4228_v39 }
 0x68d   :  { %2348 = vmatprep.subr.bf16.mxu0 %v3533_v49  ;;  %2391 = vmatprep.subr.bf16.mxu1 %v3542_v44 }
 0x690   :  { %2349 = vmatpush1.bf16.msra.mxu0 %v3549_v46  ;;  %2392 = vmatpush1.bf16.msra.mxu1 %v3560_v59 }
 0x691   :  { %2350 = vmatprep.subr.bf16.mxu0 %v3555_v58  ;;  %2393 = vmatprep.subr.bf16.mxu1 %v3573_v62  ;;  %v4229_v58 = vld [vmem:[#allocation34_spill] sm:$0xff] }
 0x692   :  { %v2175_v59 = vunpack.c.h.bf16 %v4229_v58  ;;  %v2174_v62 = vunpack.c.l.bf16 %v4229_v58 }
 0x694   :  { %2351 = vmatpush1.bf16.msra.mxu0 %v3569_v40  ;;  %2394 = vmatpush1.bf16.msra.mxu1 %v3583_v33  ;;  %v4230_v33 = vld [vmem:[#allocation36_spill] sm:$0xff] }
 0x695   :  { %2352 = vmatprep.subr.bf16.mxu0 %v3579_v63  ;;  %2395 = vmatprep.subr.bf16.mxu1 %v3587_v24  ;;  %v2179_v24 = vunpack.c.h.bf16 %v4230_v33  ;;  %v2178_v32 = vunpack.c.l.bf16 %v4230_v33  ;;  %v4231_v33 = vld [vmem:[#allocation37_spill] sm:$0xff] }
 0x698   :  { %2353 = vmatpush1.bf16.msra.mxu0 %v3595_v25  ;;  %2396 = vmatpush1.bf16.msra.mxu1 %v3601_v26 }
 0x73b   :  { %v2214_v2 = vpop.f32.mrf.mxu0  ;;  %v2257_v7 = vpop.f32.mrf.mxu1 }
 0x73c   :  { %v2266_v3 = vadd.f32 %v2214_v2, %v2172_v1  ;;  %v2268_v25 = vadd.f32 %v2257_v7, %v2174_v62  ;;  %v2332_v62 = vunpack.c.l.bf16 %v3796_v61 }
 0x73d   :  { %v2216_v35 = vpop.f32.mrf.mxu0  ;;  %v2259_v53 = vpop.f32.mrf.mxu1 }
 0x73e   :  { %v2692_v37 = vmul.f32 -1.442695, %v2266_v3  ;;  %v2267_v38 = vadd.f32 %v2216_v35, %v2173_v34  ;;  %v2269_v40 = vadd.f32 %v2259_v53, %v2175_v59  ;;  %v2330_v34 = vunpack.c.l.bf16 %v3794_v14 }
 0x73f   :  { %v2218_v52 = vpop.f32.mrf.mxu0  ;;  %v2261_v44 = vpop.f32.mrf.mxu1 }
 0x740   :  { %2955 = vpow2.f32 %v2692_v37  ;;  %v2694_v54 = vmul.f32 -1.442695, %v2267_v38  ;;  %v2270_v55 = vadd.f32 %v2218_v52, %v2176_v56  ;;  %v2696_v26 = vmul.f32 -1.442695, %v2269_v40 }
 0x741   :  { %v2220_v50 = vpop.f32.mrf.mxu0  ;;  %v2263_v63 = vpop.f32.mrf.mxu1  ;;  %v2272_v8 = vadd.f32 %v2261_v44, %v2178_v32  ;;  %v2331_v38 = vunpack.c.h.bf16 %v3794_v14  ;;  %v2333_v14 = vunpack.c.h.bf16 %v3796_v61 }
 0x742   :  { %2957 = vpow2.f32 %v2694_v54  ;;  %v2693_v49 = vmul.f32 -1.442695, %v2270_v55  ;;  %v2271_v51 = vadd.f32 %v2220_v50, %v2177_v48  ;;  %v2273_v30 = vadd.f32 %v2263_v63, %v2179_v24 }
 0x743   :  { %v2334_v54 = vunpack.c.l.bf16 %v3802_v15  ;;  %v2337_v24 = vunpack.c.h.bf16 %v4231_v33 }
 0x744   :  { %2959 = vpow2.f32 %v2693_v49  ;;  %v2695_v46 = vmul.f32 -1.442695, %v2271_v51  ;;  %v2697_v17 = vmul.f32 -1.442695, %v2273_v30  ;;  %v2335_v49 = vunpack.c.h.bf16 %v3802_v15 }
 0x745   :  { %v2336_v15 = vunpack.c.l.bf16 %v4231_v33 }
 0x746   :  { %2961 = vpow2.f32 %v2695_v46 }
 0x747   :  { %2963 = vtanh.f32 %v2268_v25 }
 0x748   :  { %2965 = vpow2.f32 %v2696_v26 }
 0x74d   :  { %v2956_v31 = vpop.eup %2955 }
 0x74e   :  { %v2280_v28 = vadd.f32 1.0, %v2956_v31 }
 0x74f   :  { %v2958_v21 = vpop.eup %2957 }
 0x750   :  { %2967 = vrcp.f32 %v2280_v28  ;;  %v2292_v29 = vadd.f32 1.0, %v2958_v21 }
 0x751   :  { %v2960_v19 = vpop.eup %2959  ;;  %2969 = vtanh.f32 %v2272_v8 }
 0x752   :  { %2971 = vrcp.f32 %v2292_v29  ;;  %v2281_v4 = vadd.f32 1.0, %v2960_v19 }
 0x753   :  { %v2962_v5 = vpop.eup %2961  ;;  %2973 = vpow2.f32 %v2697_v17 }
 0x754   :  { %2975 = vrcp.f32 %v2281_v4  ;;  %v2293_v13 = vadd.f32 1.0, %v2962_v5  ;;  %v2964_v16 = vpop.eup %2963 }
 0x755   :  { %v2966_v36 = vpop.eup %2965 }
 0x756   :  { %2977 = vrcp.f32 %v2293_v13  ;;  %v2306_v10 = vadd.f32 1.0, %v2966_v36 }
 0x758   :  { %2979 = vrcp.f32 %v2306_v10 }
 0x75d   :  { %v2968_v12 = vpop.eup %2967 }
 0x75e   :  { %v2970_v11 = vpop.eup %2969  ;;  %v2314_v45 = vmul.f32 %v2968_v12, %v2964_v16 }
 0x75f   :  { %v2972_v18 = vpop.eup %2971 }
 0x760   :  { %v2974_v60 = vpop.eup %2973  ;;  %v2312_v6 = vmul.f32 %v2972_v18, %v4063_v57 }
 0x761   :  { %v2976_v20 = vpop.eup %2975  ;;  %v2307_v27 = vadd.f32 1.0, %v2974_v60 }
 0x762   :  { %v4111_v22 = vadd.f32 %v2314_v45, %v2312_v6  ;;  %v2315_v43 = vmul.f32 %v2976_v20, %v2970_v11 }
 0x763   :  { %v2978_v23 = vpop.eup %2977 }
 0x764   :  { %v2313_v9 = vmul.f32 %v2978_v23, %v4066_v42  ;;  %2981 = vtanh.f32 %v4111_v22 }
 0x765   :  { %2983 = vrcp.f32 %v2307_v27  ;;  %v2980_v47 = vpop.eup %2979 }
 0x766   :  { %v4114_v41 = vadd.f32 %v2315_v43, %v2313_v9 }
 0x768   :  { %2985 = vtanh.f32 %v4114_v41 }
 0x771   :  { %v2982_v0 = vpop.eup %2981 }
 0x772   :  { %v2984_v57 = vpop.eup %2983  ;;  %v2320_v2 = vmul.f32 %v2982_v0, %v2980_v47 }
 0x775   :  { %v2986_v1 = vpop.eup %2985 }
 0x776   :  { %v2321_v3 = vmul.f32 %v2986_v1, %v2984_v57 }
 0x778   :  { %v2322_v7 = vpack.c.bf16 %v2321_v3, %v2320_v2 }
 0x77a   :  { %2371 = vmatmul.mubr.bf16.vlgmr.msra.gmra.mxu0 %v2322_v7  ;;  %2414 = vmatmul.mubr.bf16.vlgmr.msra.gmra.mxu1 %v2322_v7 }
 0x83a   :  { %v2372_v42 = vpop.f32.mrf.mxu0  ;;  %v2415_v37 = vpop.f32.mrf.mxu1 }
 0x83b   :  { %v2424_v35 = vadd.f32 %v2372_v42, %v2330_v34  ;;  %v2426_v25 = vadd.f32 %v2415_v37, %v2332_v62 }
 0x83c   :  { %v2374_v39 = vpop.f32.mrf.mxu0  ;;  %v2417_v48 = vpop.f32.mrf.mxu1 }
 0x83d   :  { %v2698_v56 = vmul.f32 -1.442695, %v2424_v35  ;;  %v2425_v52 = vadd.f32 %v2374_v39, %v2331_v38  ;;  %v2427_v40 = vadd.f32 %v2417_v48, %v2333_v14 }
 0x83e   :  { %v2376_v53 = vpop.f32.mrf.mxu0  ;;  %v2419_v58 = vpop.f32.mrf.mxu1 }
 0x83f   :  { %2987 = vpow2.f32 %v2698_v56  ;;  %v2700_v55 = vmul.f32 -1.442695, %v2425_v52  ;;  %v2428_v50 = vadd.f32 %v2376_v53, %v2334_v54  ;;  %v2702_v26 = vmul.f32 -1.442695, %v2427_v40 }
 0x840   :  { %v2378_v51 = vpop.f32.mrf.mxu0  ;;  %v2421_v63 = vpop.f32.mrf.mxu1  ;;  %v2430_v31 = vadd.f32 %v2419_v58, %v2336_v15 }
 0x841   :  { %2989 = vpow2.f32 %v2700_v55  ;;  %v2699_v44 = vmul.f32 -1.442695, %v2428_v50  ;;  %v2429_v46 = vadd.f32 %v2378_v51, %v2335_v49  ;;  %v2431_v32 = vadd.f32 %v2421_v63, %v2337_v24 }
 0x843   :  { %2991 = vpow2.f32 %v2699_v44  ;;  %v2701_v59 = vmul.f32 -1.442695, %v2429_v46  ;;  %v2703_v21 = vmul.f32 -1.442695, %v2431_v32 }
 0x845   :  { %2993 = vpow2.f32 %v2701_v59 }
 0x846   :  { %2995 = vtanh.f32 %v2426_v25 }
 0x847   :  { %2997 = vpow2.f32 %v2702_v26 }
 0x84c   :  { %v2988_v30 = vpop.eup %2987 }
 0x84d   :  { %v2438_v8 = vadd.f32 1.0, %v2988_v30 }
 0x84e   :  { %v2990_v28 = vpop.eup %2989 }
 0x84f   :  { %2999 = vrcp.f32 %v2438_v8  ;;  %v2450_v17 = vadd.f32 1.0, %v2990_v28 }
 0x850   :  { %v2992_v29 = vpop.eup %2991  ;;  %3001 = vtanh.f32 %v2430_v31 }
 0x851   :  { %3003 = vrcp.f32 %v2450_v17  ;;  %v2439_v61 = vadd.f32 1.0, %v2992_v29 }
 0x852   :  { %v2994_v19 = vpop.eup %2993  ;;  %3005 = vpow2.f32 %v2703_v21 }
 0x853   :  { %3007 = vrcp.f32 %v2439_v61  ;;  %v2451_v4 = vadd.f32 1.0, %v2994_v19  ;;  %v2996_v5 = vpop.eup %2995 }
 0x854   :  { %v2998_v13 = vpop.eup %2997 }
 0x855   :  { %3009 = vrcp.f32 %v2451_v4  ;;  %v2464_v45 = vadd.f32 1.0, %v2998_v13 }
 0x857   :  { %3011 = vrcp.f32 %v2464_v45 }
 0x85c   :  { %v3000_v16 = vpop.eup %2999 }
 0x85d   :  { %v3002_v36 = vpop.eup %3001  ;;  %v2472_v12 = vmul.f32 %v3000_v16, %v2996_v5 }
 0x85e   :  { %v3004_v11 = vpop.eup %3003 }
 0x85f   :  { %v3006_v18 = vpop.eup %3005  ;;  %v2470_v60 = vmul.f32 %v3004_v11, %v4111_v22 }
 0x860   :  { %v3008_v6 = vpop.eup %3007  ;;  %v2465_v23 = vadd.f32 1.0, %v3006_v18 }
 0x861   :  { %v2474_v20 = vadd.f32 %v2472_v12, %v2470_v60  ;;  %v2473_v10 = vmul.f32 %v3008_v6, %v3002_v36 }
 0x862   :  { %v3010_v43 = vpop.eup %3009 }
 0x863   :  { %3013 = vtanh.f32 %v2474_v20  ;;  %v2471_v27 = vmul.f32 %v3010_v43, %v4114_v41 }
 0x864   :  { %3015 = vrcp.f32 %v2465_v23  ;;  %v3012_v47 = vpop.eup %3011 }
 0x865   :  { %v2475_v9 = vadd.f32 %v2473_v10, %v2471_v27 }
 0x867   :  { %3017 = vtanh.f32 %v2475_v9 }
 0x870   :  { %v3014_v0 = vpop.eup %3013 }
 0x871   :  { %v2478_v57 = vmul.f32 %v3014_v0, %v3012_v47  ;;  %v3016_v1 = vpop.eup %3015 }
 0x874   :  { %v3018_v2 = vpop.eup %3017 }
 0x875   :  { %v2479_v3 = vmul.f32 %v3018_v2, %v3016_v1 }
 0x877   :  { %v2746_v7 = vpack.c.bf16 %v2479_v3, %v2478_v57 }
 0x879   :  { %2747 = vst [vmem:[#allocation5] sm:$0xff] %v2746_v7   ;;  %2752 = vst [vmem:[%s4135_s4] sm:$0xff] %v2746_v7  }
 0x87a   :  { %2498 = vsyncmov [#allocation8] }
 0x87d   :  { %s2499_s27 = vpop.sfrf %2498 }
 0x87e   :  { %p2706_p0 = scmp.ne.s32.totalorder %s2499_s27, 0 }
 0x880   :  { %2503 = shalt.err (%p2706_p0)  }
 0x881   :  { %2505 = vsyncmov [#allocation8 + $0x1] }
 0x884   :  { %s2506_s28 = vpop.sfrf %2505 }
 0x885   :  { %p2707_p1 = scmp.ne.s32.totalorder %s2506_s28, 0 }
 0x887   :  { %2510 = shalt.err (%p2707_p1)  }
 0x888   :  { %2512 = vsyncmov [#allocation8 + $0x2] }
 0x88b   :  { %s2513_s29 = vpop.sfrf %2512 }
 0x88c   :  { %p2708_p2 = scmp.ne.s32.totalorder %s2513_s29, 0 }
 0x88e   :  { %2517 = shalt.err (%p2708_p2)  }

</bundles_post_ra>
